<compile_context>
chip_gen: v7x
topology: tpu7x:2x2x1
jax: 0.10.0
libtpu: 0.0.40
codegen_flags: <defaults>
</compile_context>

<pallas_src>
import math
import numpy as np

import jax
import jax.numpy as jnp
from jax import lax
from jax.experimental import pallas as pl
from jax.experimental.pallas import tpu as pltpu  # noqa: F401  (kept for TPU-specific params if needed)

# ---- small, module-consistent sizes ------------------------------------------------
BATCH = 2
SEQ = 8
INPUT_SIZE = 32          # stands in for 784
HIDDEN = 32              # stands in for 128 (must be divisible by NUM_HEADS)
NUM_HEADS = 8
HEAD_DIM = HIDDEN // NUM_HEADS
EPS = 1e-5               # nn.LayerNorm default


# =====================================================================================
# Fused kernel: LSTM (gate order i,f,g,o like PyTorch) -> MHA -> residual + LayerNorm
# =====================================================================================
def fused_kernel(x_ref, wih_ref, whh_ref, b_ref, h0_ref, c0_ref,
                 wqkv_ref, bqkv_ref, wo_ref, bo_ref, gamma_ref, beta_ref,
                 out_ref, hn_ref, cn_ref, attn_ref):
    H = HIDDEN

    # ----------------------------- LSTM --------------------------------------------
    # Hoisted input projection: ONE (B*S, In) @ (In, 4H) matmul + bias, off the
    # recurrence critical path.  Rows are batch-major: row = b*SEQ + t.
    x_flat = x_ref[...].reshape(BATCH * SEQ, INPUT_SIZE)
    xg = jnp.dot(x_flat, wih_ref[...], preferred_element_type=jnp.float32) + b_ref[...]

    whh = whh_ref[...]                 # (H, 4H), hoisted out of the loop
    h = h0_ref[...]                    # (B, H)
    c = c0_ref[...]                    # (B, H)
    hs = []
    for t in range(SEQ):               # static unroll (SEQ = 8)
        # gather this timestep's precomputed input gates for both batch rows
        gx_t = jnp.concatenate(
            [xg[b * SEQ + t:b * SEQ + t + 1, :] for b in range(BATCH)], axis=0)   # (B, 4H)
        gates = gx_t + jnp.dot(h, whh, preferred_element_type=jnp.float32)
        i_g = jax.nn.sigmoid(gates[:, 0:H])
        f_g = jax.nn.sigmoid(gates[:, H:2 * H])
        g_g = jnp.tanh(gates[:, 2 * H:3 * H])
        o_g = jax.nn.sigmoid(gates[:, 3 * H:4 * H])
        c = f_g * c + i_g * g_g
        h = o_g * jnp.tanh(c)
        hs.append(h)

    hn_ref[...] = h
    cn_ref[...] = c

    # Batch-major flat LSTM output, rows ordered b*SEQ + t, kept resident on-chip.
    lstm_flat = jnp.concatenate(
        [jnp.concatenate([h_t[b:b + 1, :] for h_t in hs], axis=0) for b in range(BATCH)],
        axis=0)                                                       # (B*S, H)

    # --------------------- fused Q/K/V projection (one matmul) ---------------------
    qkv = (jnp.dot(lstm_flat, wqkv_ref[...], preferred_element_type=jnp.float32)
           + bqkv_ref[...])                                           # (B*S, 3H)
    q = qkv[:, 0:H].reshape(BATCH, SEQ, H)
    k = qkv[:, H:2 * H].reshape(BATCH, SEQ, H)
    v = qkv[:, 2 * H:3 * H].reshape(BATCH, SEQ, H)

    # ----------------- multi-head attention, heads stacked on sublanes -------------
    # Per-head feature columns are selected with lane masks so every matmul keeps the
    # full hidden width; all heads' scores come from ONE batched matmul.
    scale = 1.0 / math.sqrt(HEAD_DIM)
    col = lax.broadcasted_iota(jnp.int32, (1, H), 1)
    masks = [((col >= hh * HEAD_DIM) & (col < (hh + 1) * HEAD_DIM)).astype(jnp.float32)
             for hh in range(NUM_HEADS)]                               # each (1, H)

    q_stack = jnp.concatenate([q * (m * scale) for m in masks], axis=1)   # (B, heads*S, H)
    scores = jnp.einsum("bqh,bkh->bqk", q_stack, k,
                        preferred_element_type=jnp.float32)               # (B, heads*S, S)
    scores = scores - jnp.max(scores, axis=-1, keepdims=True)
    p = jnp.exp(scores)
    p = p * pl.reciprocal(jnp.sum(p, axis=-1, keepdims=True), approx=True)

    # averaged attention weights (PyTorch average_attn_weights=True)
    attn = p[:, 0:SEQ, :]
    for hh in range(1, NUM_HEADS):
        attn = attn + p[:, hh * SEQ:(hh + 1) * SEQ, :]
    attn_ref[...] = attn * (1.0 / NUM_HEADS)                              # (B, S, S)

    # context for all heads in ONE batched matmul, then per-head column mask + sum
    ctx_all = jnp.einsum("bqk,bkh->bqh", p, v,
                         preferred_element_type=jnp.float32)              # (B, heads*S, H)
    context = ctx_all[:, 0:SEQ, :] * masks[0]
    for hh in range(1, NUM_HEADS):
        context = context + ctx_all[:, hh * SEQ:(hh + 1) * SEQ, :] * masks[hh]  # (B, S, H)

    attended = (jnp.dot(context.reshape(BATCH * SEQ, H), wo_ref[...],
                        preferred_element_type=jnp.float32) + bo_ref[...])       # (B*S, H)

    # ----------------------- residual + LayerNorm ----------------------------------
    y = lstm_flat + attended
    mean = jnp.mean(y, axis=-1, keepdims=True)
    var = jnp.mean((y - mean) ** 2, axis=-1, keepdims=True)
    norm = (y - mean) * lax.rsqrt(var + EPS)
    out_ref[...] = (norm * gamma_ref[...] + beta_ref[...]).reshape(BATCH, SEQ, H)


# =====================================================================================
# Wrapper
# =====================================================================================
def memoria_cortoplazo_forward(x, params, hidden_state=None):
    """x: (B, S, In) float32 -> (output (B,S,H), (h_n, c_n) each (1,B,H), attn (B,S,S))"""
    x = x.astype(jnp.float32)
    if hidden_state is None:
        h0 = jnp.zeros((BATCH, HIDDEN), jnp.float32)
        c0 = jnp.zeros((BATCH, HIDDEN), jnp.float32)
    else:
        h0 = hidden_state[0][0].astype(jnp.float32)
        c0 = hidden_state[1][0].astype(jnp.float32)

    out, h_n, c_n, attn_w = pl.pallas_call(
        fused_kernel,
        out_shape=(
            jax.ShapeDtypeStruct((BATCH, SEQ, HIDDEN), jnp.float32),
            jax.ShapeDtypeStruct((BATCH, HIDDEN), jnp.float32),
            jax.ShapeDtypeStruct((BATCH, HIDDEN), jnp.float32),
            jax.ShapeDtypeStruct((BATCH, SEQ, SEQ), jnp.float32),
        ),
    )(x, params["w_ih_T"], params["w_hh_T"], params["b_comb"], h0, c0,
      params["wqkv"], params["bqkv"], params["wo"], params["bo"],
      params["gamma"], params["beta"])

    return out, (h_n[None], c_n[None]), attn_w


# =====================================================================================
# Deterministic parameter init (shapes implied by the PyTorch module)
# =====================================================================================
def init_params(key):
    ks = jax.random.split(key, 12)
    kk = 1.0 / math.sqrt(HIDDEN)
    u = lambda k, shape: jax.random.uniform(k, shape, jnp.float32, -kk, kk)
    p = {
        # LSTM (weights pre-transposed for x @ W): PyTorch weight_ih_l0 is (4H, In)
        "w_ih_T": u(ks[0], (INPUT_SIZE, 4 * HIDDEN)),
        "w_hh_T": u(ks[1], (HIDDEN, 4 * HIDDEN)),
        "b_ih": u(ks[2], (4 * HIDDEN,)),
        "b_hh": u(ks[3], (4 * HIDDEN,)),
        # MultiheadAttention in_proj (split into q/k/v, pre-transposed) + out_proj
        "wq": u(ks[4], (HIDDEN, HIDDEN)),
        "wk": u(ks[5], (HIDDEN, HIDDEN)),
        "wv": u(ks[6], (HIDDEN, HIDDEN)),
        "bq": u(ks[7], (1, HIDDEN)),
        "bk": u(ks[8], (1, HIDDEN)),
        "bv": u(ks[9], (1, HIDDEN)),
        "wo": u(ks[10], (HIDDEN, HIDDEN)),
        "bo": u(ks[11], (1, HIDDEN)),
        # LayerNorm
        "gamma": jnp.ones((1, HIDDEN), jnp.float32),
        "beta": jnp.zeros((1, HIDDEN), jnp.float32),
    }
    # pre-fused parameters consumed by the kernel (prepared once, outside the forward)
    p["b_comb"] = (p["b_ih"] + p["b_hh"]).reshape(1, 4 * HIDDEN)
    p["wqkv"] = jnp.concatenate([p["wq"], p["wk"], p["wv"]], axis=1)    # (H, 3H)
    p["bqkv"] = jnp.concatenate([p["bq"], p["bk"], p["bv"]], axis=1)    # (1, 3H)
    return p


# =====================================================================================
# Pure-JAX reference (same math) for a sanity check
# =====================================================================================
def reference_forward(x, p):
    H = HIDDEN
    b = p["b_ih"] + p["b_hh"]
    h = jnp.zeros((BATCH, H), jnp.float32)
    c = jnp.zeros((BATCH, H), jnp.float32)
    outs = []
    for t in range(SEQ):
        gates = x[:, t, :] @ p["w_ih_T"] + h @ p["w_hh_T"] + b
        i = jax.nn.sigmoid(gates[:, :H])
        f = jax.nn.sigmoid(gates[:, H:2 * H])
        g = jnp.tanh(gates[:, 2 * H:3 * H])
        o = jax.nn.sigmoid(gates[:, 3 * H:])
        c = f * c + i * g
        h = o * jnp.tanh(c)
        outs.append(h)
    lstm_out = jnp.stack(outs, axis=1)                                     # (B,S,H)

    q = (lstm_out @ p["wq"] + p["bq"][0]).reshape(BATCH, SEQ, NUM_HEADS, HEAD_DIM)
    k = (lstm_out @ p["wk"] + p["bk"][0]).reshape(BATCH, SEQ, NUM_HEADS, HEAD_DIM)
    v = (lstm_out @ p["wv"] + p["bv"][0]).reshape(BATCH, SEQ, NUM_HEADS, HEAD_DIM)
    scores = jnp.einsum("bqhd,bkhd->bhqk", q / math.sqrt(HEAD_DIM), k)
    pw = jax.nn.softmax(scores, axis=-1)
    ctx = jnp.einsum("bhqk,bkhd->bqhd", pw, v).reshape(BATCH, SEQ, H)
    attended = ctx @ p["wo"] + p["bo"][0]
    attn_w = pw.mean(axis=1)

    y = lstm_out + attended
    mean = y.mean(-1, keepdims=True)
    var = ((y - mean) ** 2).mean(-1, keepdims=True)
    out = (y - mean) / jnp.sqrt(var + EPS) * p["gamma"][0] + p["beta"][0]
    return out, (h[None], c[None]), attn_w


if __name__ == "__main__":
    key = jax.random.PRNGKey(0)
    kx, kp = jax.random.split(key)
    x = jax.random.normal(kx, (BATCH, SEQ, INPUT_SIZE), jnp.float32)
    params = init_params(kp)

    out, (h_n, c_n), attn_w = memoria_cortoplazo_forward(x, params)
    jax.block_until_ready((out, h_n, c_n, attn_w))

    ref_out, (ref_h, ref_c), ref_attn = reference_forward(x, params)
    assert np.allclose(np.asarray(out), np.asarray(ref_out), rtol=1e-2, atol=1e-2)
    assert np.allclose(np.asarray(h_n), np.asarray(ref_h), rtol=1e-2, atol=1e-2)
    assert np.allclose(np.asarray(c_n), np.asarray(ref_c), rtol=1e-2, atol=1e-2)
    assert np.allclose(np.asarray(attn_w), np.asarray(ref_attn), rtol=1e-2, atol=1e-2)
    assert np.all(np.isfinite(np.asarray(out)))

    print("KERNEL_OK")
</pallas_src>

<mosaic_0001>
module attributes {stable_mosaic.version = 11 : i64} {
  func.func @fused_kernel(%arg0: memref<2x8x32xf32, #tpu.memory_space<vmem>>, %arg1: memref<32x128xf32, #tpu.memory_space<vmem>>, %arg2: memref<32x128xf32, #tpu.memory_space<vmem>>, %arg3: memref<1x128xf32, #tpu.memory_space<vmem>>, %arg4: memref<2x32xf32, #tpu.memory_space<vmem>>, %arg5: memref<2x32xf32, #tpu.memory_space<vmem>>, %arg6: memref<32x96xf32, #tpu.memory_space<vmem>>, %arg7: memref<1x96xf32, #tpu.memory_space<vmem>>, %arg8: memref<32x32xf32, #tpu.memory_space<vmem>>, %arg9: memref<1x32xf32, #tpu.memory_space<vmem>>, %arg10: memref<1x32xf32, #tpu.memory_space<vmem>>, %arg11: memref<1x32xf32, #tpu.memory_space<vmem>>, %arg12: memref<2x8x32xf32, #tpu.memory_space<vmem>>, %arg13: memref<2x32xf32, #tpu.memory_space<vmem>>, %arg14: memref<2x32xf32, #tpu.memory_space<vmem>>, %arg15: memref<2x8x8xf32, #tpu.memory_space<vmem>>) attributes {dimension_semantics = [], scalar_prefetch = 0 : i64, scratch_operands = 0 : i64, tpu.core_type = #tpu.core_type<tc>} {
    %c0 = arith.constant 0 : index
    %c0_0 = arith.constant 0 : index
    %c0_1 = arith.constant 0 : index
    %0 = vector.load %arg0[%c0, %c0_0, %c0_1] : memref<2x8x32xf32, #tpu.memory_space<vmem>>, vector<2x8x32xf32>
    %1 = vector.shape_cast %0 : vector<2x8x32xf32> to vector<16x32xf32>
    %c0_2 = arith.constant 0 : index
    %c0_3 = arith.constant 0 : index
    %2 = vector.load %arg1[%c0_2, %c0_3] : memref<32x128xf32, #tpu.memory_space<vmem>>, vector<32x128xf32>
    %cst = arith.constant dense<0.000000e+00> : vector<16x128xf32>
    %3 = tpu.matmul %1, %2, %cst {dimension_numbers = #tpu.dot_dimension_numbers<[1], [0], [0], [1], [0, 0, 1, 1], [], []>} : vector<16x32xf32>, vector<32x128xf32>, vector<16x128xf32> -> vector<16x128xf32>
    %c0_4 = arith.constant 0 : index
    %c0_5 = arith.constant 0 : index
    %4 = vector.load %arg3[%c0_4, %c0_5] : memref<1x128xf32, #tpu.memory_space<vmem>>, vector<1x128xf32>
    %5 = vector.broadcast %4 : vector<1x128xf32> to vector<16x128xf32>
    %6 = arith.addf %3, %5 : vector<16x128xf32>
    %c0_6 = arith.constant 0 : index
    %c0_7 = arith.constant 0 : index
    %7 = vector.load %arg2[%c0_6, %c0_7] : memref<32x128xf32, #tpu.memory_space<vmem>>, vector<32x128xf32>
    %c0_8 = arith.constant 0 : index
    %c0_9 = arith.constant 0 : index
    %8 = vector.load %arg4[%c0_8, %c0_9] : memref<2x32xf32, #tpu.memory_space<vmem>>, vector<2x32xf32>
    %c0_10 = arith.constant 0 : index
    %c0_11 = arith.constant 0 : index
    %9 = vector.load %arg5[%c0_10, %c0_11] : memref<2x32xf32, #tpu.memory_space<vmem>>, vector<2x32xf32>
    %10 = vector.extract_strided_slice %6 {offsets = [0, 0], sizes = [1, 128], strides = [1, 1]} : vector<16x128xf32> to vector<1x128xf32>
    %11 = vector.extract_strided_slice %6 {offsets = [8, 0], sizes = [1, 128], strides = [1, 1]} : vector<16x128xf32> to vector<1x128xf32>
    %12 = tpu.concatenate %10, %11 in 0 : vector<1x128xf32>, vector<1x128xf32> -> vector<2x128xf32>
    %cst_12 = arith.constant dense<0.000000e+00> : vector<2x128xf32>
    %13 = tpu.matmul %8, %7, %cst_12 {dimension_numbers = #tpu.dot_dimension_numbers<[1], [0], [0], [1], [0, 0, 1, 1], [], []>} : vector<2x32xf32>, vector<32x128xf32>, vector<2x128xf32> -> vector<2x128xf32>
    %14 = arith.addf %12, %13 : vector<2x128xf32>
    %15 = vector.extract_strided_slice %14 {offsets = [0, 0], sizes = [2, 32], strides = [1, 1]} : vector<2x128xf32> to vector<2x32xf32>
    %16 = arith.negf %15 : vector<2x32xf32>
    %17 = math.exp %16 : vector<2x32xf32>
    %cst_13 = arith.constant 1.000000e+00 : f32
    %18 = vector.broadcast %cst_13 : f32 to vector<2x32xf32>
    %19 = arith.addf %18, %17 : vector<2x32xf32>
    %20 = arith.divf %18, %19 : vector<2x32xf32>
    %21 = vector.extract_strided_slice %14 {offsets = [0, 32], sizes = [2, 32], strides = [1, 1]} : vector<2x128xf32> to vector<2x32xf32>
    %22 = arith.negf %21 : vector<2x32xf32>
    %23 = math.exp %22 : vector<2x32xf32>
    %cst_14 = arith.constant 1.000000e+00 : f32
    %24 = vector.broadcast %cst_14 : f32 to vector<2x32xf32>
    %25 = arith.addf %24, %23 : vector<2x32xf32>
    %26 = arith.divf %24, %25 : vector<2x32xf32>
    %27 = vector.extract_strided_slice %14 {offsets = [0, 64], sizes = [2, 32], strides = [1, 1]} : vector<2x128xf32> to vector<2x32xf32>
    %28 = math.tanh %27 : vector<2x32xf32>
    %29 = vector.extract_strided_slice %14 {offsets = [0, 96], sizes = [2, 32], strides = [1, 1]} : vector<2x128xf32> to vector<2x32xf32>
    %30 = arith.negf %29 : vector<2x32xf32>
    %31 = math.exp %30 : vector<2x32xf32>
    %cst_15 = arith.constant 1.000000e+00 : f32
    %32 = vector.broadcast %cst_15 : f32 to vector<2x32xf32>
    %33 = arith.addf %32, %31 : vector<2x32xf32>
    %34 = arith.divf %32, %33 : vector<2x32xf32>
    %35 = arith.mulf %26, %9 : vector<2x32xf32>
    %36 = arith.mulf %20, %28 : vector<2x32xf32>
    %37 = arith.addf %35, %36 : vector<2x32xf32>
    %38 = math.tanh %37 : vector<2x32xf32>
    %39 = arith.mulf %34, %38 : vector<2x32xf32>
    %40 = vector.extract_strided_slice %6 {offsets = [1, 0], sizes = [1, 128], strides = [1, 1]} : vector<16x128xf32> to vector<1x128xf32>
    %41 = vector.extract_strided_slice %6 {offsets = [9, 0], sizes = [1, 128], strides = [1, 1]} : vector<16x128xf32> to vector<1x128xf32>
    %42 = tpu.concatenate %40, %41 in 0 : vector<1x128xf32>, vector<1x128xf32> -> vector<2x128xf32>
    %cst_16 = arith.constant dense<0.000000e+00> : vector<2x128xf32>
    %43 = tpu.matmul %39, %7, %cst_16 {dimension_numbers = #tpu.dot_dimension_numbers<[1], [0], [0], [1], [0, 0, 1, 1], [], []>} : vector<2x32xf32>, vector<32x128xf32>, vector<2x128xf32> -> vector<2x128xf32>
    %44 = arith.addf %42, %43 : vector<2x128xf32>
    %45 = vector.extract_strided_slice %44 {offsets = [0, 0], sizes = [2, 32], strides = [1, 1]} : vector<2x128xf32> to vector<2x32xf32>
    %46 = arith.negf %45 : vector<2x32xf32>
    %47 = math.exp %46 : vector<2x32xf32>
    %cst_17 = arith.constant 1.000000e+00 : f32
    %48 = vector.broadcast %cst_17 : f32 to vector<2x32xf32>
    %49 = arith.addf %48, %47 : vector<2x32xf32>
    %50 = arith.divf %48, %49 : vector<2x32xf32>
    %51 = vector.extract_strided_slice %44 {offsets = [0, 32], sizes = [2, 32], strides = [1, 1]} : vector<2x128xf32> to vector<2x32xf32>
    %52 = arith.negf %51 : vector<2x32xf32>
    %53 = math.exp %52 : vector<2x32xf32>
    %cst_18 = arith.constant 1.000000e+00 : f32
    %54 = vector.broadcast %cst_18 : f32 to vector<2x32xf32>
    %55 = arith.addf %54, %53 : vector<2x32xf32>
    %56 = arith.divf %54, %55 : vector<2x32xf32>
    %57 = vector.extract_strided_slice %44 {offsets = [0, 64], sizes = [2, 32], strides = [1, 1]} : vector<2x128xf32> to vector<2x32xf32>
    %58 = math.tanh %57 : vector<2x32xf32>
    %59 = vector.extract_strided_slice %44 {offsets = [0, 96], sizes = [2, 32], strides = [1, 1]} : vector<2x128xf32> to vector<2x32xf32>
    %60 = arith.negf %59 : vector<2x32xf32>
    %61 = math.exp %60 : vector<2x32xf32>
    %cst_19 = arith.constant 1.000000e+00 : f32
    %62 = vector.broadcast %cst_19 : f32 to vector<2x32xf32>
    %63 = arith.addf %62, %61 : vector<2x32xf32>
    %64 = arith.divf %62, %63 : vector<2x32xf32>
    %65 = arith.mulf %56, %37 : vector<2x32xf32>
    %66 = arith.mulf %50, %58 : vector<2x32xf32>
    %67 = arith.addf %65, %66 : vector<2x32xf32>
    %68 = math.tanh %67 : vector<2x32xf32>
    %69 = arith.mulf %64, %68 : vector<2x32xf32>
    %70 = vector.extract_strided_slice %6 {offsets = [2, 0], sizes = [1, 128], strides = [1, 1]} : vector<16x128xf32> to vector<1x128xf32>
    %71 = vector.extract_strided_slice %6 {offsets = [10, 0], sizes = [1, 128], strides = [1, 1]} : vector<16x128xf32> to vector<1x128xf32>
    %72 = tpu.concatenate %70, %71 in 0 : vector<1x128xf32>, vector<1x128xf32> -> vector<2x128xf32>
    %cst_20 = arith.constant dense<0.000000e+00> : vector<2x128xf32>
    %73 = tpu.matmul %69, %7, %cst_20 {dimension_numbers = #tpu.dot_dimension_numbers<[1], [0], [0], [1], [0, 0, 1, 1], [], []>} : vector<2x32xf32>, vector<32x128xf32>, vector<2x128xf32> -> vector<2x128xf32>
    %74 = arith.addf %72, %73 : vector<2x128xf32>
    %75 = vector.extract_strided_slice %74 {offsets = [0, 0], sizes = [2, 32], strides = [1, 1]} : vector<2x128xf32> to vector<2x32xf32>
    %76 = arith.negf %75 : vector<2x32xf32>
    %77 = math.exp %76 : vector<2x32xf32>
    %cst_21 = arith.constant 1.000000e+00 : f32
    %78 = vector.broadcast %cst_21 : f32 to vector<2x32xf32>
    %79 = arith.addf %78, %77 : vector<2x32xf32>
    %80 = arith.divf %78, %79 : vector<2x32xf32>
    %81 = vector.extract_strided_slice %74 {offsets = [0, 32], sizes = [2, 32], strides = [1, 1]} : vector<2x128xf32> to vector<2x32xf32>
    %82 = arith.negf %81 : vector<2x32xf32>
    %83 = math.exp %82 : vector<2x32xf32>
    %cst_22 = arith.constant 1.000000e+00 : f32
    %84 = vector.broadcast %cst_22 : f32 to vector<2x32xf32>
    %85 = arith.addf %84, %83 : vector<2x32xf32>
    %86 = arith.divf %84, %85 : vector<2x32xf32>
    %87 = vector.extract_strided_slice %74 {offsets = [0, 64], sizes = [2, 32], strides = [1, 1]} : vector<2x128xf32> to vector<2x32xf32>
    %88 = math.tanh %87 : vector<2x32xf32>
    %89 = vector.extract_strided_slice %74 {offsets = [0, 96], sizes = [2, 32], strides = [1, 1]} : vector<2x128xf32> to vector<2x32xf32>
    %90 = arith.negf %89 : vector<2x32xf32>
    %91 = math.exp %90 : vector<2x32xf32>
    %cst_23 = arith.constant 1.000000e+00 : f32
    %92 = vector.broadcast %cst_23 : f32 to vector<2x32xf32>
    %93 = arith.addf %92, %91 : vector<2x32xf32>
    %94 = arith.divf %92, %93 : vector<2x32xf32>
    %95 = arith.mulf %86, %67 : vector<2x32xf32>
    %96 = arith.mulf %80, %88 : vector<2x32xf32>
    %97 = arith.addf %95, %96 : vector<2x32xf32>
    %98 = math.tanh %97 : vector<2x32xf32>
    %99 = arith.mulf %94, %98 : vector<2x32xf32>
    %100 = vector.extract_strided_slice %6 {offsets = [3, 0], sizes = [1, 128], strides = [1, 1]} : vector<16x128xf32> to vector<1x128xf32>
    %101 = vector.extract_strided_slice %6 {offsets = [11, 0], sizes = [1, 128], strides = [1, 1]} : vector<16x128xf32> to vector<1x128xf32>
    %102 = tpu.concatenate %100, %101 in 0 : vector<1x128xf32>, vector<1x128xf32> -> vector<2x128xf32>
    %cst_24 = arith.constant dense<0.000000e+00> : vector<2x128xf32>
    %103 = tpu.matmul %99, %7, %cst_24 {dimension_numbers = #tpu.dot_dimension_numbers<[1], [0], [0], [1], [0, 0, 1, 1], [], []>} : vector<2x32xf32>, vector<32x128xf32>, vector<2x128xf32> -> vector<2x128xf32>
    %104 = arith.addf %102, %103 : vector<2x128xf32>
    %105 = vector.extract_strided_slice %104 {offsets = [0, 0], sizes = [2, 32], strides = [1, 1]} : vector<2x128xf32> to vector<2x32xf32>
    %106 = arith.negf %105 : vector<2x32xf32>
    %107 = math.exp %106 : vector<2x32xf32>
    %cst_25 = arith.constant 1.000000e+00 : f32
    %108 = vector.broadcast %cst_25 : f32 to vector<2x32xf32>
    %109 = arith.addf %108, %107 : vector<2x32xf32>
    %110 = arith.divf %108, %109 : vector<2x32xf32>
    %111 = vector.extract_strided_slice %104 {offsets = [0, 32], sizes = [2, 32], strides = [1, 1]} : vector<2x128xf32> to vector<2x32xf32>
    %112 = arith.negf %111 : vector<2x32xf32>
    %113 = math.exp %112 : vector<2x32xf32>
    %cst_26 = arith.constant 1.000000e+00 : f32
    %114 = vector.broadcast %cst_26 : f32 to vector<2x32xf32>
    %115 = arith.addf %114, %113 : vector<2x32xf32>
    %116 = arith.divf %114, %115 : vector<2x32xf32>
    %117 = vector.extract_strided_slice %104 {offsets = [0, 64], sizes = [2, 32], strides = [1, 1]} : vector<2x128xf32> to vector<2x32xf32>
    %118 = math.tanh %117 : vector<2x32xf32>
    %119 = vector.extract_strided_slice %104 {offsets = [0, 96], sizes = [2, 32], strides = [1, 1]} : vector<2x128xf32> to vector<2x32xf32>
    %120 = arith.negf %119 : vector<2x32xf32>
    %121 = math.exp %120 : vector<2x32xf32>
    %cst_27 = arith.constant 1.000000e+00 : f32
    %122 = vector.broadcast %cst_27 : f32 to vector<2x32xf32>
    %123 = arith.addf %122, %121 : vector<2x32xf32>
    %124 = arith.divf %122, %123 : vector<2x32xf32>
    %125 = arith.mulf %116, %97 : vector<2x32xf32>
    %126 = arith.mulf %110, %118 : vector<2x32xf32>
    %127 = arith.addf %125, %126 : vector<2x32xf32>
    %128 = math.tanh %127 : vector<2x32xf32>
    %129 = arith.mulf %124, %128 : vector<2x32xf32>
    %130 = vector.extract_strided_slice %6 {offsets = [4, 0], sizes = [1, 128], strides = [1, 1]} : vector<16x128xf32> to vector<1x128xf32>
    %131 = vector.extract_strided_slice %6 {offsets = [12, 0], sizes = [1, 128], strides = [1, 1]} : vector<16x128xf32> to vector<1x128xf32>
    %132 = tpu.concatenate %130, %131 in 0 : vector<1x128xf32>, vector<1x128xf32> -> vector<2x128xf32>
    %cst_28 = arith.constant dense<0.000000e+00> : vector<2x128xf32>
    %133 = tpu.matmul %129, %7, %cst_28 {dimension_numbers = #tpu.dot_dimension_numbers<[1], [0], [0], [1], [0, 0, 1, 1], [], []>} : vector<2x32xf32>, vector<32x128xf32>, vector<2x128xf32> -> vector<2x128xf32>
    %134 = arith.addf %132, %133 : vector<2x128xf32>
    %135 = vector.extract_strided_slice %134 {offsets = [0, 0], sizes = [2, 32], strides = [1, 1]} : vector<2x128xf32> to vector<2x32xf32>
    %136 = arith.negf %135 : vector<2x32xf32>
    %137 = math.exp %136 : vector<2x32xf32>
    %cst_29 = arith.constant 1.000000e+00 : f32
    %138 = vector.broadcast %cst_29 : f32 to vector<2x32xf32>
    %139 = arith.addf %138, %137 : vector<2x32xf32>
    %140 = arith.divf %138, %139 : vector<2x32xf32>
    %141 = vector.extract_strided_slice %134 {offsets = [0, 32], sizes = [2, 32], strides = [1, 1]} : vector<2x128xf32> to vector<2x32xf32>
    %142 = arith.negf %141 : vector<2x32xf32>
    %143 = math.exp %142 : vector<2x32xf32>
    %cst_30 = arith.constant 1.000000e+00 : f32
    %144 = vector.broadcast %cst_30 : f32 to vector<2x32xf32>
    %145 = arith.addf %144, %143 : vector<2x32xf32>
    %146 = arith.divf %144, %145 : vector<2x32xf32>
    %147 = vector.extract_strided_slice %134 {offsets = [0, 64], sizes = [2, 32], strides = [1, 1]} : vector<2x128xf32> to vector<2x32xf32>
    %148 = math.tanh %147 : vector<2x32xf32>
    %149 = vector.extract_strided_slice %134 {offsets = [0, 96], sizes = [2, 32], strides = [1, 1]} : vector<2x128xf32> to vector<2x32xf32>
    %150 = arith.negf %149 : vector<2x32xf32>
    %151 = math.exp %150 : vector<2x32xf32>
    %cst_31 = arith.constant 1.000000e+00 : f32
    %152 = vector.broadcast %cst_31 : f32 to vector<2x32xf32>
    %153 = arith.addf %152, %151 : vector<2x32xf32>
    %154 = arith.divf %152, %153 : vector<2x32xf32>
    %155 = arith.mulf %146, %127 : vector<2x32xf32>
    %156 = arith.mulf %140, %148 : vector<2x32xf32>
    %157 = arith.addf %155, %156 : vector<2x32xf32>
    %158 = math.tanh %157 : vector<2x32xf32>
    %159 = arith.mulf %154, %158 : vector<2x32xf32>
    %160 = vector.extract_strided_slice %6 {offsets = [5, 0], sizes = [1, 128], strides = [1, 1]} : vector<16x128xf32> to vector<1x128xf32>
    %161 = vector.extract_strided_slice %6 {offsets = [13, 0], sizes = [1, 128], strides = [1, 1]} : vector<16x128xf32> to vector<1x128xf32>
    %162 = tpu.concatenate %160, %161 in 0 : vector<1x128xf32>, vector<1x128xf32> -> vector<2x128xf32>
    %cst_32 = arith.constant dense<0.000000e+00> : vector<2x128xf32>
    %163 = tpu.matmul %159, %7, %cst_32 {dimension_numbers = #tpu.dot_dimension_numbers<[1], [0], [0], [1], [0, 0, 1, 1], [], []>} : vector<2x32xf32>, vector<32x128xf32>, vector<2x128xf32> -> vector<2x128xf32>
    %164 = arith.addf %162, %163 : vector<2x128xf32>
    %165 = vector.extract_strided_slice %164 {offsets = [0, 0], sizes = [2, 32], strides = [1, 1]} : vector<2x128xf32> to vector<2x32xf32>
    %166 = arith.negf %165 : vector<2x32xf32>
    %167 = math.exp %166 : vector<2x32xf32>
    %cst_33 = arith.constant 1.000000e+00 : f32
    %168 = vector.broadcast %cst_33 : f32 to vector<2x32xf32>
    %169 = arith.addf %168, %167 : vector<2x32xf32>
    %170 = arith.divf %168, %169 : vector<2x32xf32>
    %171 = vector.extract_strided_slice %164 {offsets = [0, 32], sizes = [2, 32], strides = [1, 1]} : vector<2x128xf32> to vector<2x32xf32>
    %172 = arith.negf %171 : vector<2x32xf32>
    %173 = math.exp %172 : vector<2x32xf32>
    %cst_34 = arith.constant 1.000000e+00 : f32
    %174 = vector.broadcast %cst_34 : f32 to vector<2x32xf32>
    %175 = arith.addf %174, %173 : vector<2x32xf32>
    %176 = arith.divf %174, %175 : vector<2x32xf32>
    %177 = vector.extract_strided_slice %164 {offsets = [0, 64], sizes = [2, 32], strides = [1, 1]} : vector<2x128xf32> to vector<2x32xf32>
    %178 = math.tanh %177 : vector<2x32xf32>
    %179 = vector.extract_strided_slice %164 {offsets = [0, 96], sizes = [2, 32], strides = [1, 1]} : vector<2x128xf32> to vector<2x32xf32>
    %180 = arith.negf %179 : vector<2x32xf32>
    %181 = math.exp %180 : vector<2x32xf32>
    %cst_35 = arith.constant 1.000000e+00 : f32
    %182 = vector.broadcast %cst_35 : f32 to vector<2x32xf32>
    %183 = arith.addf %182, %181 : vector<2x32xf32>
    %184 = arith.divf %182, %183 : vector<2x32xf32>
    %185 = arith.mulf %176, %157 : vector<2x32xf32>
    %186 = arith.mulf %170, %178 : vector<2x32xf32>
    %187 = arith.addf %185, %186 : vector<2x32xf32>
    %188 = math.tanh %187 : vector<2x32xf32>
    %189 = arith.mulf %184, %188 : vector<2x32xf32>
    %190 = vector.extract_strided_slice %6 {offsets = [6, 0], sizes = [1, 128], strides = [1, 1]} : vector<16x128xf32> to vector<1x128xf32>
    %191 = vector.extract_strided_slice %6 {offsets = [14, 0], sizes = [1, 128], strides = [1, 1]} : vector<16x128xf32> to vector<1x128xf32>
    %192 = tpu.concatenate %190, %191 in 0 : vector<1x128xf32>, vector<1x128xf32> -> vector<2x128xf32>
    %cst_36 = arith.constant dense<0.000000e+00> : vector<2x128xf32>
    %193 = tpu.matmul %189, %7, %cst_36 {dimension_numbers = #tpu.dot_dimension_numbers<[1], [0], [0], [1], [0, 0, 1, 1], [], []>} : vector<2x32xf32>, vector<32x128xf32>, vector<2x128xf32> -> vector<2x128xf32>
    %194 = arith.addf %192, %193 : vector<2x128xf32>
    %195 = vector.extract_strided_slice %194 {offsets = [0, 0], sizes = [2, 32], strides = [1, 1]} : vector<2x128xf32> to vector<2x32xf32>
    %196 = arith.negf %195 : vector<2x32xf32>
    %197 = math.exp %196 : vector<2x32xf32>
    %cst_37 = arith.constant 1.000000e+00 : f32
    %198 = vector.broadcast %cst_37 : f32 to vector<2x32xf32>
    %199 = arith.addf %198, %197 : vector<2x32xf32>
    %200 = arith.divf %198, %199 : vector<2x32xf32>
    %201 = vector.extract_strided_slice %194 {offsets = [0, 32], sizes = [2, 32], strides = [1, 1]} : vector<2x128xf32> to vector<2x32xf32>
    %202 = arith.negf %201 : vector<2x32xf32>
    %203 = math.exp %202 : vector<2x32xf32>
    %cst_38 = arith.constant 1.000000e+00 : f32
    %204 = vector.broadcast %cst_38 : f32 to vector<2x32xf32>
    %205 = arith.addf %204, %203 : vector<2x32xf32>
    %206 = arith.divf %204, %205 : vector<2x32xf32>
    %207 = vector.extract_strided_slice %194 {offsets = [0, 64], sizes = [2, 32], strides = [1, 1]} : vector<2x128xf32> to vector<2x32xf32>
    %208 = math.tanh %207 : vector<2x32xf32>
    %209 = vector.extract_strided_slice %194 {offsets = [0, 96], sizes = [2, 32], strides = [1, 1]} : vector<2x128xf32> to vector<2x32xf32>
    %210 = arith.negf %209 : vector<2x32xf32>
    %211 = math.exp %210 : vector<2x32xf32>
    %cst_39 = arith.constant 1.000000e+00 : f32
    %212 = vector.broadcast %cst_39 : f32 to vector<2x32xf32>
    %213 = arith.addf %212, %211 : vector<2x32xf32>
    %214 = arith.divf %212, %213 : vector<2x32xf32>
    %215 = arith.mulf %206, %187 : vector<2x32xf32>
    %216 = arith.mulf %200, %208 : vector<2x32xf32>
    %217 = arith.addf %215, %216 : vector<2x32xf32>
    %218 = math.tanh %217 : vector<2x32xf32>
    %219 = arith.mulf %214, %218 : vector<2x32xf32>
    %220 = vector.extract_strided_slice %6 {offsets = [7, 0], sizes = [1, 128], strides = [1, 1]} : vector<16x128xf32> to vector<1x128xf32>
    %221 = vector.extract_strided_slice %6 {offsets = [15, 0], sizes = [1, 128], strides = [1, 1]} : vector<16x128xf32> to vector<1x128xf32>
    %222 = tpu.concatenate %220, %221 in 0 : vector<1x128xf32>, vector<1x128xf32> -> vector<2x128xf32>
    %cst_40 = arith.constant dense<0.000000e+00> : vector<2x128xf32>
    %223 = tpu.matmul %219, %7, %cst_40 {dimension_numbers = #tpu.dot_dimension_numbers<[1], [0], [0], [1], [0, 0, 1, 1], [], []>} : vector<2x32xf32>, vector<32x128xf32>, vector<2x128xf32> -> vector<2x128xf32>
    %224 = arith.addf %222, %223 : vector<2x128xf32>
    %225 = vector.extract_strided_slice %224 {offsets = [0, 0], sizes = [2, 32], strides = [1, 1]} : vector<2x128xf32> to vector<2x32xf32>
    %226 = arith.negf %225 : vector<2x32xf32>
    %227 = math.exp %226 : vector<2x32xf32>
    %cst_41 = arith.constant 1.000000e+00 : f32
    %228 = vector.broadcast %cst_41 : f32 to vector<2x32xf32>
    %229 = arith.addf %228, %227 : vector<2x32xf32>
    %230 = arith.divf %228, %229 : vector<2x32xf32>
    %231 = vector.extract_strided_slice %224 {offsets = [0, 32], sizes = [2, 32], strides = [1, 1]} : vector<2x128xf32> to vector<2x32xf32>
    %232 = arith.negf %231 : vector<2x32xf32>
    %233 = math.exp %232 : vector<2x32xf32>
    %cst_42 = arith.constant 1.000000e+00 : f32
    %234 = vector.broadcast %cst_42 : f32 to vector<2x32xf32>
    %235 = arith.addf %234, %233 : vector<2x32xf32>
    %236 = arith.divf %234, %235 : vector<2x32xf32>
    %237 = vector.extract_strided_slice %224 {offsets = [0, 64], sizes = [2, 32], strides = [1, 1]} : vector<2x128xf32> to vector<2x32xf32>
    %238 = math.tanh %237 : vector<2x32xf32>
    %239 = vector.extract_strided_slice %224 {offsets = [0, 96], sizes = [2, 32], strides = [1, 1]} : vector<2x128xf32> to vector<2x32xf32>
    %240 = arith.negf %239 : vector<2x32xf32>
    %241 = math.exp %240 : vector<2x32xf32>
    %cst_43 = arith.constant 1.000000e+00 : f32
    %242 = vector.broadcast %cst_43 : f32 to vector<2x32xf32>
    %243 = arith.addf %242, %241 : vector<2x32xf32>
    %244 = arith.divf %242, %243 : vector<2x32xf32>
    %245 = arith.mulf %236, %217 : vector<2x32xf32>
    %246 = arith.mulf %230, %238 : vector<2x32xf32>
    %247 = arith.addf %245, %246 : vector<2x32xf32>
    %248 = math.tanh %247 : vector<2x32xf32>
    %249 = arith.mulf %244, %248 : vector<2x32xf32>
    %c0_44 = arith.constant 0 : index
    %c0_45 = arith.constant 0 : index
    %250 = vector.load %arg13[%c0_44, %c0_45] : memref<2x32xf32, #tpu.memory_space<vmem>>, vector<2x32xf32>
    tpu.vector_store %arg13[%c0_44, %c0_45], %249 {strides = array<i32>} : memref<2x32xf32, #tpu.memory_space<vmem>>, vector<2x32xf32>,
    %c0_46 = arith.constant 0 : index
    %c0_47 = arith.constant 0 : index
    %251 = vector.load %arg14[%c0_46, %c0_47] : memref<2x32xf32, #tpu.memory_space<vmem>>, vector<2x32xf32>
    tpu.vector_store %arg14[%c0_46, %c0_47], %247 {strides = array<i32>} : memref<2x32xf32, #tpu.memory_space<vmem>>, vector<2x32xf32>,
    %252 = vector.extract_strided_slice %39 {offsets = [0, 0], sizes = [1, 32], strides = [1, 1]} : vector<2x32xf32> to vector<1x32xf32>
    %253 = vector.extract_strided_slice %69 {offsets = [0, 0], sizes = [1, 32], strides = [1, 1]} : vector<2x32xf32> to vector<1x32xf32>
    %254 = vector.extract_strided_slice %99 {offsets = [0, 0], sizes = [1, 32], strides = [1, 1]} : vector<2x32xf32> to vector<1x32xf32>
    %255 = vector.extract_strided_slice %129 {offsets = [0, 0], sizes = [1, 32], strides = [1, 1]} : vector<2x32xf32> to vector<1x32xf32>
    %256 = vector.extract_strided_slice %159 {offsets = [0, 0], sizes = [1, 32], strides = [1, 1]} : vector<2x32xf32> to vector<1x32xf32>
    %257 = vector.extract_strided_slice %189 {offsets = [0, 0], sizes = [1, 32], strides = [1, 1]} : vector<2x32xf32> to vector<1x32xf32>
    %258 = vector.extract_strided_slice %219 {offsets = [0, 0], sizes = [1, 32], strides = [1, 1]} : vector<2x32xf32> to vector<1x32xf32>
    %259 = vector.extract_strided_slice %249 {offsets = [0, 0], sizes = [1, 32], strides = [1, 1]} : vector<2x32xf32> to vector<1x32xf32>
    %260 = tpu.concatenate %252, %253, %254, %255, %256, %257, %258, %259 in 0 : vector<1x32xf32>, vector<1x32xf32>, vector<1x32xf32>, vector<1x32xf32>, vector<1x32xf32>, vector<1x32xf32>, vector<1x32xf32>, vector<1x32xf32> -> vector<8x32xf32>
    %261 = vector.extract_strided_slice %39 {offsets = [1, 0], sizes = [1, 32], strides = [1, 1]} : vector<2x32xf32> to vector<1x32xf32>
    %262 = vector.extract_strided_slice %69 {offsets = [1, 0], sizes = [1, 32], strides = [1, 1]} : vector<2x32xf32> to vector<1x32xf32>
    %263 = vector.extract_strided_slice %99 {offsets = [1, 0], sizes = [1, 32], strides = [1, 1]} : vector<2x32xf32> to vector<1x32xf32>
    %264 = vector.extract_strided_slice %129 {offsets = [1, 0], sizes = [1, 32], strides = [1, 1]} : vector<2x32xf32> to vector<1x32xf32>
    %265 = vector.extract_strided_slice %159 {offsets = [1, 0], sizes = [1, 32], strides = [1, 1]} : vector<2x32xf32> to vector<1x32xf32>
    %266 = vector.extract_strided_slice %189 {offsets = [1, 0], sizes = [1, 32], strides = [1, 1]} : vector<2x32xf32> to vector<1x32xf32>
    %267 = vector.extract_strided_slice %219 {offsets = [1, 0], sizes = [1, 32], strides = [1, 1]} : vector<2x32xf32> to vector<1x32xf32>
    %268 = vector.extract_strided_slice %249 {offsets = [1, 0], sizes = [1, 32], strides = [1, 1]} : vector<2x32xf32> to vector<1x32xf32>
    %269 = tpu.concatenate %261, %262, %263, %264, %265, %266, %267, %268 in 0 : vector<1x32xf32>, vector<1x32xf32>, vector<1x32xf32>, vector<1x32xf32>, vector<1x32xf32>, vector<1x32xf32>, vector<1x32xf32>, vector<1x32xf32> -> vector<8x32xf32>
    %270 = tpu.concatenate %260, %269 in 0 : vector<8x32xf32>, vector<8x32xf32> -> vector<16x32xf32>
    %c0_48 = arith.constant 0 : index
    %c0_49 = arith.constant 0 : index
    %271 = vector.load %arg6[%c0_48, %c0_49] : memref<32x96xf32, #tpu.memory_space<vmem>>, vector<32x96xf32>
    %cst_50 = arith.constant dense<0.000000e+00> : vector<16x96xf32>
    %272 = tpu.matmul %270, %271, %cst_50 {dimension_numbers = #tpu.dot_dimension_numbers<[1], [0], [0], [1], [0, 0, 1, 1], [], []>} : vector<16x32xf32>, vector<32x96xf32>, vector<16x96xf32> -> vector<16x96xf32>
    %c0_51 = arith.constant 0 : index
    %c0_52 = arith.constant 0 : index
    %273 = vector.load %arg7[%c0_51, %c0_52] : memref<1x96xf32, #tpu.memory_space<vmem>>, vector<1x96xf32>
    %274 = vector.broadcast %273 : vector<1x96xf32> to vector<16x96xf32>
    %275 = arith.addf %272, %274 : vector<16x96xf32>
    %276 = vector.extract_strided_slice %275 {offsets = [0, 0], sizes = [16, 32], strides = [1, 1]} : vector<16x96xf32> to vector<16x32xf32>
    %277 = vector.shape_cast %276 : vector<16x32xf32> to vector<2x8x32xf32>
    %278 = vector.extract_strided_slice %275 {offsets = [0, 32], sizes = [16, 32], strides = [1, 1]} : vector<16x96xf32> to vector<16x32xf32>
    %279 = vector.shape_cast %278 : vector<16x32xf32> to vector<2x8x32xf32>
    %280 = vector.extract_strided_slice %275 {offsets = [0, 64], sizes = [16, 32], strides = [1, 1]} : vector<16x96xf32> to vector<16x32xf32>
    %281 = vector.shape_cast %280 : vector<16x32xf32> to vector<2x8x32xf32>
    %282 = tpu.iota {dimensions = array<i32: 1>} : vector<1x32xi32>
    %c0_i32 = arith.constant 0 : i32
    %283 = vector.broadcast %c0_i32 : i32 to vector<1x32xi32>
    %284 = arith.cmpi sge, %282, %283 : vector<1x32xi32>
    %c4_i32 = arith.constant 4 : i32
    %285 = vector.broadcast %c4_i32 : i32 to vector<1x32xi32>
    %286 = arith.cmpi slt, %282, %285 : vector<1x32xi32>
    %287 = arith.andi %284, %286 : vector<1x32xi1>
    %288 = arith.extui %287 : vector<1x32xi1> to vector<1x32xi32>
    %289 = arith.sitofp %288 : vector<1x32xi32> to vector<1x32xf32>
    %c4_i32_53 = arith.constant 4 : i32
    %290 = vector.broadcast %c4_i32_53 : i32 to vector<1x32xi32>
    %291 = arith.cmpi sge, %282, %290 : vector<1x32xi32>
    %c8_i32 = arith.constant 8 : i32
    %292 = vector.broadcast %c8_i32 : i32 to vector<1x32xi32>
    %293 = arith.cmpi slt, %282, %292 : vector<1x32xi32>
    %294 = arith.andi %291, %293 : vector<1x32xi1>
    %295 = arith.extui %294 : vector<1x32xi1> to vector<1x32xi32>
    %296 = arith.sitofp %295 : vector<1x32xi32> to vector<1x32xf32>
    %c8_i32_54 = arith.constant 8 : i32
    %297 = vector.broadcast %c8_i32_54 : i32 to vector<1x32xi32>
    %298 = arith.cmpi sge, %282, %297 : vector<1x32xi32>
    %c12_i32 = arith.constant 12 : i32
    %299 = vector.broadcast %c12_i32 : i32 to vector<1x32xi32>
    %300 = arith.cmpi slt, %282, %299 : vector<1x32xi32>
    %301 = arith.andi %298, %300 : vector<1x32xi1>
    %302 = arith.extui %301 : vector<1x32xi1> to vector<1x32xi32>
    %303 = arith.sitofp %302 : vector<1x32xi32> to vector<1x32xf32>
    %c12_i32_55 = arith.constant 12 : i32
    %304 = vector.broadcast %c12_i32_55 : i32 to vector<1x32xi32>
    %305 = arith.cmpi sge, %282, %304 : vector<1x32xi32>
    %c16_i32 = arith.constant 16 : i32
    %306 = vector.broadcast %c16_i32 : i32 to vector<1x32xi32>
    %307 = arith.cmpi slt, %282, %306 : vector<1x32xi32>
    %308 = arith.andi %305, %307 : vector<1x32xi1>
    %309 = arith.extui %308 : vector<1x32xi1> to vector<1x32xi32>
    %310 = arith.sitofp %309 : vector<1x32xi32> to vector<1x32xf32>
    %c16_i32_56 = arith.constant 16 : i32
    %311 = vector.broadcast %c16_i32_56 : i32 to vector<1x32xi32>
    %312 = arith.cmpi sge, %282, %311 : vector<1x32xi32>
    %c20_i32 = arith.constant 20 : i32
    %313 = vector.broadcast %c20_i32 : i32 to vector<1x32xi32>
    %314 = arith.cmpi slt, %282, %313 : vector<1x32xi32>
    %315 = arith.andi %312, %314 : vector<1x32xi1>
    %316 = arith.extui %315 : vector<1x32xi1> to vector<1x32xi32>
    %317 = arith.sitofp %316 : vector<1x32xi32> to vector<1x32xf32>
    %c20_i32_57 = arith.constant 20 : i32
    %318 = vector.broadcast %c20_i32_57 : i32 to vector<1x32xi32>
    %319 = arith.cmpi sge, %282, %318 : vector<1x32xi32>
    %c24_i32 = arith.constant 24 : i32
    %320 = vector.broadcast %c24_i32 : i32 to vector<1x32xi32>
    %321 = arith.cmpi slt, %282, %320 : vector<1x32xi32>
    %322 = arith.andi %319, %321 : vector<1x32xi1>
    %323 = arith.extui %322 : vector<1x32xi1> to vector<1x32xi32>
    %324 = arith.sitofp %323 : vector<1x32xi32> to vector<1x32xf32>
    %c24_i32_58 = arith.constant 24 : i32
    %325 = vector.broadcast %c24_i32_58 : i32 to vector<1x32xi32>
    %326 = arith.cmpi sge, %282, %325 : vector<1x32xi32>
    %c28_i32 = arith.constant 28 : i32
    %327 = vector.broadcast %c28_i32 : i32 to vector<1x32xi32>
    %328 = arith.cmpi slt, %282, %327 : vector<1x32xi32>
    %329 = arith.andi %326, %328 : vector<1x32xi1>
    %330 = arith.extui %329 : vector<1x32xi1> to vector<1x32xi32>
    %331 = arith.sitofp %330 : vector<1x32xi32> to vector<1x32xf32>
    %c28_i32_59 = arith.constant 28 : i32
    %332 = vector.broadcast %c28_i32_59 : i32 to vector<1x32xi32>
    %333 = arith.cmpi sge, %282, %332 : vector<1x32xi32>
    %c32_i32 = arith.constant 32 : i32
    %334 = vector.broadcast %c32_i32 : i32 to vector<1x32xi32>
    %335 = arith.cmpi slt, %282, %334 : vector<1x32xi32>
    %336 = arith.andi %333, %335 : vector<1x32xi1>
    %337 = arith.extui %336 : vector<1x32xi1> to vector<1x32xi32>
    %338 = arith.sitofp %337 : vector<1x32xi32> to vector<1x32xf32>
    %cst_60 = arith.constant 5.000000e-01 : f32
    %339 = vector.broadcast %cst_60 : f32 to vector<1x32xf32>
    %340 = arith.mulf %289, %339 : vector<1x32xf32>
    %341 = vector.shape_cast %340 : vector<1x32xf32> to vector<1x1x32xf32>
    %342 = vector.broadcast %341 : vector<1x1x32xf32> to vector<2x8x32xf32>
    %343 = arith.mulf %277, %342 : vector<2x8x32xf32>
    %cst_61 = arith.constant 5.000000e-01 : f32
    %344 = vector.broadcast %cst_61 : f32 to vector<1x32xf32>
    %345 = arith.mulf %296, %344 : vector<1x32xf32>
    %346 = vector.shape_cast %345 : vector<1x32xf32> to vector<1x1x32xf32>
    %347 = vector.broadcast %346 : vector<1x1x32xf32> to vector<2x8x32xf32>
    %348 = arith.mulf %277, %347 : vector<2x8x32xf32>
    %cst_62 = arith.constant 5.000000e-01 : f32
    %349 = vector.broadcast %cst_62 : f32 to vector<1x32xf32>
    %350 = arith.mulf %303, %349 : vector<1x32xf32>
    %351 = vector.shape_cast %350 : vector<1x32xf32> to vector<1x1x32xf32>
    %352 = vector.broadcast %351 : vector<1x1x32xf32> to vector<2x8x32xf32>
    %353 = arith.mulf %277, %352 : vector<2x8x32xf32>
    %cst_63 = arith.constant 5.000000e-01 : f32
    %354 = vector.broadcast %cst_63 : f32 to vector<1x32xf32>
    %355 = arith.mulf %310, %354 : vector<1x32xf32>
    %356 = vector.shape_cast %355 : vector<1x32xf32> to vector<1x1x32xf32>
    %357 = vector.broadcast %356 : vector<1x1x32xf32> to vector<2x8x32xf32>
    %358 = arith.mulf %277, %357 : vector<2x8x32xf32>
    %cst_64 = arith.constant 5.000000e-01 : f32
    %359 = vector.broadcast %cst_64 : f32 to vector<1x32xf32>
    %360 = arith.mulf %317, %359 : vector<1x32xf32>
    %361 = vector.shape_cast %360 : vector<1x32xf32> to vector<1x1x32xf32>
    %362 = vector.broadcast %361 : vector<1x1x32xf32> to vector<2x8x32xf32>
    %363 = arith.mulf %277, %362 : vector<2x8x32xf32>
    %cst_65 = arith.constant 5.000000e-01 : f32
    %364 = vector.broadcast %cst_65 : f32 to vector<1x32xf32>
    %365 = arith.mulf %324, %364 : vector<1x32xf32>
    %366 = vector.shape_cast %365 : vector<1x32xf32> to vector<1x1x32xf32>
    %367 = vector.broadcast %366 : vector<1x1x32xf32> to vector<2x8x32xf32>
    %368 = arith.mulf %277, %367 : vector<2x8x32xf32>
    %cst_66 = arith.constant 5.000000e-01 : f32
    %369 = vector.broadcast %cst_66 : f32 to vector<1x32xf32>
    %370 = arith.mulf %331, %369 : vector<1x32xf32>
    %371 = vector.shape_cast %370 : vector<1x32xf32> to vector<1x1x32xf32>
    %372 = vector.broadcast %371 : vector<1x1x32xf32> to vector<2x8x32xf32>
    %373 = arith.mulf %277, %372 : vector<2x8x32xf32>
    %cst_67 = arith.constant 5.000000e-01 : f32
    %374 = vector.broadcast %cst_67 : f32 to vector<1x32xf32>
    %375 = arith.mulf %338, %374 : vector<1x32xf32>
    %376 = vector.shape_cast %375 : vector<1x32xf32> to vector<1x1x32xf32>
    %377 = vector.broadcast %376 : vector<1x1x32xf32> to vector<2x8x32xf32>
    %378 = arith.mulf %277, %377 : vector<2x8x32xf32>
    %379 = tpu.concatenate %343, %348, %353, %358, %363, %368, %373, %378 in 1 : vector<2x8x32xf32>, vector<2x8x32xf32>, vector<2x8x32xf32>, vector<2x8x32xf32>, vector<2x8x32xf32>, vector<2x8x32xf32>, vector<2x8x32xf32>, vector<2x8x32xf32> -> vector<2x64x32xf32>
    "tpu.trace_start"() <{level = 10 : i32, message = "bqh,bkh->bqk"}> : () -> ()
    %cst_68 = arith.constant dense<0.000000e+00> : vector<2x64x8xf32>
    %380 = tpu.matmul %379, %279, %cst_68 {dimension_numbers = #tpu.dot_dimension_numbers<[2], [2], [1], [1], [0, 0, 0, 1, 1, 1], [0], [0]>} : vector<2x64x32xf32>, vector<2x8x32xf32>, vector<2x64x8xf32> -> vector<2x64x8xf32>
    "tpu.trace_stop"() : () -> ()
    %cst_69 = arith.constant dense<0xFF800000> : vector<2x64xf32>
    %381 = vector.multi_reduction <maximumf>, %380, %cst_69 [2] : vector<2x64x8xf32> to vector<2x64xf32>
    %382 = vector.shape_cast %381 : vector<2x64xf32> to vector<2x64x1xf32>
    %383 = vector.broadcast %382 : vector<2x64x1xf32> to vector<2x64x8xf32>
    %384 = arith.subf %380, %383 : vector<2x64x8xf32>
    %385 = math.exp %384 : vector<2x64x8xf32>
    %cst_70 = arith.constant dense<0.000000e+00> : vector<2x64xf32>
    %386 = vector.multi_reduction <add>, %385, %cst_70 [2] : vector<2x64x8xf32> to vector<2x64xf32>
    %387 = vector.shape_cast %386 : vector<2x64xf32> to vector<2x64x1xf32>
    %388 = tpu.reciprocal %387 {approx = true} : vector<2x64x1xf32> -> vector<2x64x1xf32>
    %389 = vector.broadcast %388 : vector<2x64x1xf32> to vector<2x64x8xf32>
    %390 = arith.mulf %385, %389 : vector<2x64x8xf32>
    %391 = vector.extract_strided_slice %390 {offsets = [0, 0, 0], sizes = [2, 8, 8], strides = [1, 1, 1]} : vector<2x64x8xf32> to vector<2x8x8xf32>
    %392 = vector.extract_strided_slice %390 {offsets = [0, 8, 0], sizes = [2, 8, 8], strides = [1, 1, 1]} : vector<2x64x8xf32> to vector<2x8x8xf32>
    %393 = arith.addf %391, %392 : vector<2x8x8xf32>
    %394 = vector.extract_strided_slice %390 {offsets = [0, 16, 0], sizes = [2, 8, 8], strides = [1, 1, 1]} : vector<2x64x8xf32> to vector<2x8x8xf32>
    %395 = arith.addf %393, %394 : vector<2x8x8xf32>
    %396 = vector.extract_strided_slice %390 {offsets = [0, 24, 0], sizes = [2, 8, 8], strides = [1, 1, 1]} : vector<2x64x8xf32> to vector<2x8x8xf32>
    %397 = arith.addf %395, %396 : vector<2x8x8xf32>
    %398 = vector.extract_strided_slice %390 {offsets = [0, 32, 0], sizes = [2, 8, 8], strides = [1, 1, 1]} : vector<2x64x8xf32> to vector<2x8x8xf32>
    %399 = arith.addf %397, %398 : vector<2x8x8xf32>
    %400 = vector.extract_strided_slice %390 {offsets = [0, 40, 0], sizes = [2, 8, 8], strides = [1, 1, 1]} : vector<2x64x8xf32> to vector<2x8x8xf32>
    %401 = arith.addf %399, %400 : vector<2x8x8xf32>
    %402 = vector.extract_strided_slice %390 {offsets = [0, 48, 0], sizes = [2, 8, 8], strides = [1, 1, 1]} : vector<2x64x8xf32> to vector<2x8x8xf32>
    %403 = arith.addf %401, %402 : vector<2x8x8xf32>
    %404 = vector.extract_strided_slice %390 {offsets = [0, 56, 0], sizes = [2, 8, 8], strides = [1, 1, 1]} : vector<2x64x8xf32> to vector<2x8x8xf32>
    %405 = arith.addf %403, %404 : vector<2x8x8xf32>
    %cst_71 = arith.constant 1.250000e-01 : f32
    %406 = vector.broadcast %cst_71 : f32 to vector<2x8x8xf32>
    %407 = arith.mulf %405, %406 : vector<2x8x8xf32>
    %c0_72 = arith.constant 0 : index
    %c0_73 = arith.constant 0 : index
    %c0_74 = arith.constant 0 : index
    %408 = vector.load %arg15[%c0_72, %c0_73, %c0_74] : memref<2x8x8xf32, #tpu.memory_space<vmem>>, vector<2x8x8xf32>
    tpu.vector_store %arg15[%c0_72, %c0_73, %c0_74], %407 {strides = array<i32>} : memref<2x8x8xf32, #tpu.memory_space<vmem>>, vector<2x8x8xf32>,
    "tpu.trace_start"() <{level = 10 : i32, message = "bqk,bkh->bqh"}> : () -> ()
    %cst_75 = arith.constant dense<0.000000e+00> : vector<2x64x32xf32>
    %409 = tpu.matmul %390, %281, %cst_75 {dimension_numbers = #tpu.dot_dimension_numbers<[2], [1], [1], [2], [0, 0, 0, 1, 1, 2], [0], [0]>} : vector<2x64x8xf32>, vector<2x8x32xf32>, vector<2x64x32xf32> -> vector<2x64x32xf32>
    "tpu.trace_stop"() : () -> ()
    %410 = vector.extract_strided_slice %409 {offsets = [0, 0, 0], sizes = [2, 8, 32], strides = [1, 1, 1]} : vector<2x64x32xf32> to vector<2x8x32xf32>
    %411 = vector.shape_cast %289 : vector<1x32xf32> to vector<1x1x32xf32>
    %412 = vector.broadcast %411 : vector<1x1x32xf32> to vector<2x8x32xf32>
    %413 = arith.mulf %410, %412 : vector<2x8x32xf32>
    %414 = vector.extract_strided_slice %409 {offsets = [0, 8, 0], sizes = [2, 8, 32], strides = [1, 1, 1]} : vector<2x64x32xf32> to vector<2x8x32xf32>
    %415 = vector.shape_cast %296 : vector<1x32xf32> to vector<1x1x32xf32>
    %416 = vector.broadcast %415 : vector<1x1x32xf32> to vector<2x8x32xf32>
    %417 = arith.mulf %414, %416 : vector<2x8x32xf32>
    %418 = arith.addf %413, %417 : vector<2x8x32xf32>
    %419 = vector.extract_strided_slice %409 {offsets = [0, 16, 0], sizes = [2, 8, 32], strides = [1, 1, 1]} : vector<2x64x32xf32> to vector<2x8x32xf32>
    %420 = vector.shape_cast %303 : vector<1x32xf32> to vector<1x1x32xf32>
    %421 = vector.broadcast %420 : vector<1x1x32xf32> to vector<2x8x32xf32>
    %422 = arith.mulf %419, %421 : vector<2x8x32xf32>
    %423 = arith.addf %418, %422 : vector<2x8x32xf32>
    %424 = vector.extract_strided_slice %409 {offsets = [0, 24, 0], sizes = [2, 8, 32], strides = [1, 1, 1]} : vector<2x64x32xf32> to vector<2x8x32xf32>
    %425 = vector.shape_cast %310 : vector<1x32xf32> to vector<1x1x32xf32>
    %426 = vector.broadcast %425 : vector<1x1x32xf32> to vector<2x8x32xf32>
    %427 = arith.mulf %424, %426 : vector<2x8x32xf32>
    %428 = arith.addf %423, %427 : vector<2x8x32xf32>
    %429 = vector.extract_strided_slice %409 {offsets = [0, 32, 0], sizes = [2, 8, 32], strides = [1, 1, 1]} : vector<2x64x32xf32> to vector<2x8x32xf32>
    %430 = vector.shape_cast %317 : vector<1x32xf32> to vector<1x1x32xf32>
    %431 = vector.broadcast %430 : vector<1x1x32xf32> to vector<2x8x32xf32>
    %432 = arith.mulf %429, %431 : vector<2x8x32xf32>
    %433 = arith.addf %428, %432 : vector<2x8x32xf32>
    %434 = vector.extract_strided_slice %409 {offsets = [0, 40, 0], sizes = [2, 8, 32], strides = [1, 1, 1]} : vector<2x64x32xf32> to vector<2x8x32xf32>
    %435 = vector.shape_cast %324 : vector<1x32xf32> to vector<1x1x32xf32>
    %436 = vector.broadcast %435 : vector<1x1x32xf32> to vector<2x8x32xf32>
    %437 = arith.mulf %434, %436 : vector<2x8x32xf32>
    %438 = arith.addf %433, %437 : vector<2x8x32xf32>
    %439 = vector.extract_strided_slice %409 {offsets = [0, 48, 0], sizes = [2, 8, 32], strides = [1, 1, 1]} : vector<2x64x32xf32> to vector<2x8x32xf32>
    %440 = vector.shape_cast %331 : vector<1x32xf32> to vector<1x1x32xf32>
    %441 = vector.broadcast %440 : vector<1x1x32xf32> to vector<2x8x32xf32>
    %442 = arith.mulf %439, %441 : vector<2x8x32xf32>
    %443 = arith.addf %438, %442 : vector<2x8x32xf32>
    %444 = vector.extract_strided_slice %409 {offsets = [0, 56, 0], sizes = [2, 8, 32], strides = [1, 1, 1]} : vector<2x64x32xf32> to vector<2x8x32xf32>
    %445 = vector.shape_cast %338 : vector<1x32xf32> to vector<1x1x32xf32>
    %446 = vector.broadcast %445 : vector<1x1x32xf32> to vector<2x8x32xf32>
    %447 = arith.mulf %444, %446 : vector<2x8x32xf32>
    %448 = arith.addf %443, %447 : vector<2x8x32xf32>
    %449 = vector.shape_cast %448 : vector<2x8x32xf32> to vector<16x32xf32>
    %c0_76 = arith.constant 0 : index
    %c0_77 = arith.constant 0 : index
    %450 = vector.load %arg8[%c0_76, %c0_77] : memref<32x32xf32, #tpu.memory_space<vmem>>, vector<32x32xf32>
    %cst_78 = arith.constant dense<0.000000e+00> : vector<16x32xf32>
    %451 = tpu.matmul %449, %450, %cst_78 {dimension_numbers = #tpu.dot_dimension_numbers<[1], [0], [0], [1], [0, 0, 1, 1], [], []>} : vector<16x32xf32>, vector<32x32xf32>, vector<16x32xf32> -> vector<16x32xf32>
    %c0_79 = arith.constant 0 : index
    %c0_80 = arith.constant 0 : index
    %452 = vector.load %arg9[%c0_79, %c0_80] : memref<1x32xf32, #tpu.memory_space<vmem>>, vector<1x32xf32>
    %453 = vector.broadcast %452 : vector<1x32xf32> to vector<16x32xf32>
    %454 = arith.addf %451, %453 : vector<16x32xf32>
    %455 = arith.addf %270, %454 : vector<16x32xf32>
    %cst_81 = arith.constant dense<0.000000e+00> : vector<16xf32>
    %456 = vector.multi_reduction <add>, %455, %cst_81 [1] : vector<16x32xf32> to vector<16xf32>
    %457 = vector.shape_cast %456 : vector<16xf32> to vector<16x1xf32>
    %cst_82 = arith.constant 3.200000e+01 : f32
    %458 = vector.broadcast %cst_82 : f32 to vector<16x1xf32>
    %459 = arith.divf %457, %458 : vector<16x1xf32>
    %460 = vector.broadcast %459 : vector<16x1xf32> to vector<16x32xf32>
    %461 = arith.subf %455, %460 : vector<16x32xf32>
    %462 = arith.mulf %461, %461 : vector<16x32xf32>
    %cst_83 = arith.constant dense<0.000000e+00> : vector<16xf32>
    %463 = vector.multi_reduction <add>, %462, %cst_83 [1] : vector<16x32xf32> to vector<16xf32>
    %464 = vector.shape_cast %463 : vector<16xf32> to vector<16x1xf32>
    %cst_84 = arith.constant 3.200000e+01 : f32
    %465 = vector.broadcast %cst_84 : f32 to vector<16x1xf32>
    %466 = arith.divf %464, %465 : vector<16x1xf32>
    %467 = vector.broadcast %459 : vector<16x1xf32> to vector<16x32xf32>
    %468 = arith.subf %455, %467 : vector<16x32xf32>
    %cst_85 = arith.constant 9.99999974E-6 : f32
    %469 = vector.broadcast %cst_85 : f32 to vector<16x1xf32>
    %470 = arith.addf %466, %469 : vector<16x1xf32>
    %471 = math.rsqrt %470 : vector<16x1xf32>
    %472 = vector.broadcast %471 : vector<16x1xf32> to vector<16x32xf32>
    %473 = arith.mulf %468, %472 : vector<16x32xf32>
    %c0_86 = arith.constant 0 : index
    %c0_87 = arith.constant 0 : index
    %474 = vector.load %arg10[%c0_86, %c0_87] : memref<1x32xf32, #tpu.memory_space<vmem>>, vector<1x32xf32>
    %475 = vector.broadcast %474 : vector<1x32xf32> to vector<16x32xf32>
    %476 = arith.mulf %473, %475 : vector<16x32xf32>
    %c0_88 = arith.constant 0 : index
    %c0_89 = arith.constant 0 : index
    %477 = vector.load %arg11[%c0_88, %c0_89] : memref<1x32xf32, #tpu.memory_space<vmem>>, vector<1x32xf32>
    %478 = vector.broadcast %477 : vector<1x32xf32> to vector<16x32xf32>
    %479 = arith.addf %476, %478 : vector<16x32xf32>
    %480 = vector.shape_cast %479 : vector<16x32xf32> to vector<2x8x32xf32>
    %c0_90 = arith.constant 0 : index
    %c0_91 = arith.constant 0 : index
    %c0_92 = arith.constant 0 : index
    %481 = vector.load %arg12[%c0_90, %c0_91, %c0_92] : memref<2x8x32xf32, #tpu.memory_space<vmem>>, vector<2x8x32xf32>
    tpu.vector_store %arg12[%c0_90, %c0_91, %c0_92], %480 {strides = array<i32>} : memref<2x8x32xf32, #tpu.memory_space<vmem>>, vector<2x8x32xf32>,
    return
  }
}

</mosaic_0001>

<bundles_post_ra>
// kernel: tpu_custom_call.1
= control target key start
LH: loop header
LB: loop body
LE: loop exit
PB: predicated region body
PF: predicated region fallthrough
CT: control target
= control target key end

     0   :  { %21 = vsyncpa [#allocation3], 0  ;;  %s3736_s0 = inlined_call_operand.hbm [shape: f32[2,8,32], index: 0, kind: input, shape index: {}]   ;;  %s3737_s1 = inlined_call_operand.hbm [shape: f32[32,128], index: 1, kind: input, shape index: {}]   ;;  %s3738_s2 = inlined_call_operand.hbm [shape: f32[32,128], index: 2, kind: input, shape index: {}]   ;;  %s3739_s3 = inlined_call_operand.vmem [shape: f32[1,128], index: 3, kind: input, shape index: {}]   ;;  %s3740_s4 = inlined_call_operand.vmem [shape: f32[2,32], index: 4, kind: input, shape index: {}]   ;;  %s3741_s5 = inlined_call_operand.vmem [shape: f32[2,32], index: 5, kind: input, shape index: {}]   ;;  %s3742_s6 = inlined_call_operand.hbm [shape: f32[32,96], index: 6, kind: input, shape index: {}]   ;;  %s3743_s7 = inlined_call_operand.vmem [shape: f32[1,96], index: 7, kind: input, shape index: {}]   ;;  %s3744_s8 = inlined_call_operand.hbm [shape: f32[32,32], index: 8, kind: input, shape index: {}]   ;;  %s3745_s9 = inlined_call_operand.vmem [shape: f32[1,32], index: 9, kind: input, shape index: {}]   ;;  %s3746_s10 = inlined_call_operand.vmem [shape: f32[1,32], index: 10, kind: input, shape index: {}]   ;;  %s3747_s11 = inlined_call_operand.vmem [shape: f32[1,32], index: 11, kind: input, shape index: {}]   ;;  %s3748_s12 = inlined_call_operand.hbm [shape: f32[2,8,32], index: 12, kind: output, shape index: {0}]   ;;  %s3749_s13 = inlined_call_operand.hbm [shape: f32[2,32], index: 13, kind: output, shape index: {1}]   ;;  %s3750_s14 = inlined_call_operand.hbm [shape: f32[2,32], index: 14, kind: output, shape index: {2}]   ;;  %s3751_s15 = inlined_call_operand.hbm [shape: f32[2,8,8], index: 15, kind: output, shape index: {3}]  }
   0x1   :  { %22 = vsyncpa [#allocation6], 0 }
   0x2   :  { %23 = vsyncpa [#allocation9], 0 }
   0x3   :  { %24 = vsyncpa [#allocation4], 0 }
   0x4   :  { %25 = vsyncpa [#allocation13], 0 }
   0x5   :  { %26 = vsyncpa [#allocation16], 0  ;;  %s3046_s18 = smov [#allocation5]   ;;  %s3047_s20 = smov [#allocation8]  }
   0x6   :  { %s44_s19 = sshll.u32 %s3046_s18, 4  ;;  %s74_s21 = sshll.u32 %s3047_s20, 4  ;;  %s45_s19 = int_to_ptr.vmem [resolvable:$true] %s44_s19  ;;  %s3143_s21 = int_to_ptr.vmem [resolvable:$true] %s74_s21 }
   0x7   :  { %s2836_s24 = scalar_lea.hbm %s3737_s1, 512 }
   0x8   :  { %p2837_p0 = scmp.ne.s32.totalorder %s3737_s1, %s2836_s24  ;;  %p2840_p1 = scmp.lt.u32.totalorder %s2836_s24, %s3737_s1 }
   0xa   :  { %p2842_p2 = pnand %p2840_p1, %p2837_p0 }
   0xc   :  { %2845 = shalt.err (!%p2842_p2)
}
   0xd   :  { %s2846_s29 = scalar_lea.vmem %s45_s19, 512  ;;  %p2851_p4 = scmp.lt.s32.totalorder %s45_s19, %s45_s19 }
   0xe   :  { %p2847_p3 = scmp.ne.s32.totalorder %s45_s19, %s2846_s29  ;;  %p2852_p5 = scmp.lt.s32.totalorder %s2846_s29, %s2846_s29 }
  0x10   :  { %p2853_p6 = por %p2852_p5, %p2851_p4 }
  0x12   :  { %p2854_p7 = pnand %p2853_p6, %p2847_p3 }
  0x14   :  { %2857 = shalt.err (!%p2854_p7)
}
  0x15   :  { %s3048_s30 = smov 128   ;;  %s3049_s16 = smov 8  }
  0x16   :  { %50 = dma.hbm_to_vmem [thread:$0]  %s3737_s1, 512, %s45_s19, [#allocation6], %s3048_s30, %s3048_s30, %s3049_s16  }
  0x17   :  { %s2858_s23 = scalar_lea.hbm %s3742_s6, 512 }
  0x18   :  { %p2859_p8 = scmp.ne.s32.totalorder %s3742_s6, %s2858_s23  ;;  %p2862_p9 = scmp.lt.u32.totalorder %s2858_s23, %s3742_s6 }
  0x1a   :  { %p2864_p10 = pnand %p2862_p9, %p2859_p8 }
  0x1c   :  { %2867 = shalt.err (!%p2864_p10)
}
  0x1d   :  { %s2868_s28 = scalar_lea.vmem %s3143_s21, 512  ;;  %p2873_p12 = scmp.lt.s32.totalorder %s3143_s21, %s3143_s21 }
  0x1e   :  { %p2869_p11 = scmp.ne.s32.totalorder %s3143_s21, %s2868_s28  ;;  %p2874_p13 = scmp.lt.s32.totalorder %s2868_s28, %s2868_s28 }
  0x20   :  { %p2875_p0 = por %p2874_p13, %p2873_p12 }
  0x22   :  { %p2876_p1 = pnand %p2875_p0, %p2869_p11 }
  0x24   :  { %2879 = shalt.err (!%p2876_p1)
}
  0x25   :  { %80 = dma.hbm_to_vmem [thread:$0]  %s3742_s6, 512, %s3143_s21, [#allocation9], %s3048_s30, %s3048_s30, %s3049_s16  }
  0x26   :  { %s3050_s29 = smov [#allocation2]   ;;  %s3051_s18 = smov [#allocation7]  }
  0x27   :  { %s32_s17 = sshll.u32 %s3050_s29, 4  ;;  %s56_s20 = sshll.u32 %s3051_s18, 4  ;;  %s33_s17 = int_to_ptr.vmem [resolvable:$true] %s32_s17  ;;  %s3180_s20 = int_to_ptr.vmem [resolvable:$true] %s56_s20 }
  0x28   :  { %s2880_s24 = scalar_lea.hbm %s3736_s0, 256 }
  0x29   :  { %p2881_p2 = scmp.ne.s32.totalorder %s3736_s0, %s2880_s24  ;;  %p2884_p3 = scmp.lt.u32.totalorder %s2880_s24, %s3736_s0 }
  0x2b   :  { %p2886_p4 = pnand %p2884_p3, %p2881_p2 }
  0x2d   :  { %2889 = shalt.err (!%p2886_p4)
}
  0x2e   :  { %s2890_s6 = scalar_lea.vmem %s33_s17, 256  ;;  %p2895_p6 = scmp.lt.s32.totalorder %s33_s17, %s33_s17 }
  0x2f   :  { %p2891_p5 = scmp.ne.s32.totalorder %s33_s17, %s2890_s6  ;;  %p2896_p7 = scmp.lt.s32.totalorder %s2890_s6, %s2890_s6 }
  0x31   :  { %p2897_p8 = por %p2896_p7, %p2895_p6 }
  0x33   :  { %p2898_p9 = pnand %p2897_p8, %p2891_p5 }
  0x35   :  { %2901 = shalt.err (!%p2898_p9)
}
  0x36   :  { %38 = dma.hbm_to_vmem [thread:$0]  %s3736_s0, 256, %s33_s17, [#allocation3], %s3048_s30, %s3048_s30, %s3049_s16  }
  0x37   :  { %s2902_s18 = scalar_lea.hbm %s3738_s2, 512 }
  0x38   :  { %p2903_p10 = scmp.ne.s32.totalorder %s3738_s2, %s2902_s18  ;;  %p2906_p11 = scmp.lt.u32.totalorder %s2902_s18, %s3738_s2 }
  0x3a   :  { %p2908_p12 = pnand %p2906_p11, %p2903_p10 }
  0x3c   :  { %2911 = shalt.err (!%p2908_p12)
}
  0x3d   :  { %s2912_s26 = scalar_lea.vmem %s3180_s20, 512  ;;  %p2917_p0 = scmp.lt.s32.totalorder %s3180_s20, %s3180_s20 }
  0x3e   :  { %p2913_p13 = scmp.ne.s32.totalorder %s3180_s20, %s2912_s26  ;;  %p2918_p1 = scmp.lt.s32.totalorder %s2912_s26, %s2912_s26 }
  0x40   :  { %p2919_p2 = por %p2918_p1, %p2917_p0 }
  0x42   :  { %p2920_p3 = pnand %p2919_p2, %p2913_p13 }
  0x44   :  { %2923 = shalt.err (!%p2920_p3)
}
  0x45   :  { %62 = dma.hbm_to_vmem [thread:$0]  %s3738_s2, 512, %s3180_s20, [#allocation6], %s3048_s30, %s3048_s30, %s3049_s16  }
  0x46   :  { %s3052_s27 = smov [#allocation10]   ;;  %s2924_s1 = scalar_lea.hbm %s3744_s8, 512 }
  0x47   :  { %s88_s28 = sshll.u32 %s3052_s27, 4  ;;  %p2925_p4 = scmp.ne.s32.totalorder %s3744_s8, %s2924_s1  ;;  %s89_s28 = int_to_ptr.vmem [resolvable:$true] %s88_s28 }
  0x48   :  { %p2928_p5 = scmp.lt.u32.totalorder %s2924_s1, %s3744_s8 }
  0x4a   :  { %p2930_p6 = pnand %p2928_p5, %p2925_p4 }
  0x4c   :  { %2933 = shalt.err (!%p2930_p6)
}
  0x4d   :  { %s2934_s23 = scalar_lea.vmem %s89_s28, 512  ;;  %p2939_p8 = scmp.lt.s32.totalorder %s89_s28, %s89_s28 }
  0x4e   :  { %p2935_p7 = scmp.ne.s32.totalorder %s89_s28, %s2934_s23  ;;  %p2940_p9 = scmp.lt.s32.totalorder %s2934_s23, %s2934_s23 }
  0x50   :  { %p2941_p10 = por %p2940_p9, %p2939_p8 }
  0x52   :  { %p2942_p11 = pnand %p2941_p10, %p2935_p7 }
  0x54   :  { %2945 = shalt.err (!%p2942_p11)
}
  0x55   :  { %94 = dma.hbm_to_vmem [thread:$0]  %s3744_s8, 512, %s89_s28, [#allocation9], %s3048_s30, %s3048_s30, %s3049_s16  }
  0x56   :  { %3034 = dma.done.wait [#allocation3], 256  }
  0x57   :  { %3035 = vsyncadd [#allocation3], 4294967040 }
  0x58   :  { %3036 = dma.done.wait [#allocation6], 1024  }
  0x59   :  { %3037 = vsyncadd [#allocation6], 4294966272 }
  0x5a   :  { %3038 = dma.done.wait [#allocation9], 1024  }
  0x5b   :  { %3039 = vsyncadd [#allocation9], 4294966272  ;;  %v3053_v0 = vmov 0.0|0.0   ;;  %vm3054_vm0 = vmmov 0   ;;  %v3055_v1 = vmov 0.0   ;;  %v118_v2 = vld [vmem:[#allocation5] sm:$0xff] }
  0x5c   :  { %2623 = vmatprep.subr.bf16.mxu1 %v3053_v0  ;;  %2457 = vmatprep.mubr.msk.f32.mxu1 %vm3054_vm0, %v3055_v1  ;;  %v119_v3 = vld [vmem:[#allocation5 + $0x8] sm:$0xff]  ;;  %v120_v4 = vld [vmem:[#allocation5 + $0x10] sm:$0xff]  ;;  %vm3752_vm1 = vcmask 261120   ;;  %v121_v6 = vld [vmem:[#allocation5 + $0x18] sm:$0xff]  ;;  %vm220_vm2 = vcmask 1040384   ;;  %s3057_s17 = smov 32  }
  0x5d   :  { %v2615_v5 = vpack.c.bf16 %v119_v3, %v118_v2  ;;  %v211_v7 = vld [vmem:[#allocation7] sm:$0xff]  ;;  %v212_v8 = vld [vmem:[#allocation7 + $0x8] sm:$0xff]  ;;  %v2619_v9 = vpack.c.bf16 %v121_v6, %v120_v4  ;;  %v116_v11 = vld [vmem:[#allocation2] sm:$0xff]  ;;  %vm1084_vm3 = vcmask 1041408   ;;  %vm1086_vm4 = vcmask 1042432   ;;  %s3058_s28 = smov 96  }
  0x5e   :  { %v3235_v10 = vpack.c.bf16 %v212_v8, %v211_v7  ;;  %v213_v12 = vld [vmem:[#allocation7 + $0x10] sm:$0xff]  ;;  %2446 = vmatprep.mubr.msk.f32.mxu0 %vm3752_vm1, %v116_v11  ;;  %v214_v13 = vld [vmem:[#allocation7 + $0x18] sm:$0xff]  ;;  %vm1088_vm5 = vcmask 1043456   ;;  %vm1090_vm6 = vcmask 1044480   ;;  %vm1092_vm7 = vcmask 1045504  }
  0x5f   :  { %2616 = vmatprep.subr.bf16.mxu0 %v2615_v5  ;;  %v3239_v14 = vpack.c.bf16 %v214_v13, %v213_v12  ;;  %v117_v15 = vld [vmem:[#allocation2 + $0x8] sm:$0xff]  ;;  %v215_v16 = vld [vmem:[%s3740_s4] sm:$0x3]  ;;  %vm1094_vm8 = vcmask 1046528  }
  0x60   :  { %2618 = vmatpush3.bf16.msra.mxu0 %v2615_v5  ;;  %2625 = vmatpush3.bf16.msra.mxu1 %v3235_v10  ;;  %v2275_v17 = vld [vmem:[%s3739_s3] ss:$0 sm:$0xff]  ;;  %s3056_s3 = smov 64  }
  0x61   :  { %2620 = vmatprep.subr.bf16.mxu0 %v2619_v9  ;;  %2626 = vmatprep.subr.bf16.mxu1 %v3053_v0  ;;  %v216_v48 = vld [vmem:[%s3741_s5] sm:$0x3] }
  0x64   :  { %2622 = vmatpush3.bf16.msra.mxu0 %v2619_v9  ;;  %2628 = vmatpush3.bf16.msra.mxu1 %v3239_v14 }
  0x65   :  { %2629 = vmatprep.subr.bf16.mxu0 %v3053_v0  ;;  %2635 = vmatprep.subr.bf16.mxu1 %v3053_v0 }
  0x67   :  { %2447 = vmatmul.mubr.msk.f32.vlgmr.msra.gmra.mrb[0].mxu0 %vm3752_vm1, %v117_v15  ;;  %2458 = vmatmul.mubr.msk.f32.vlgmr.msra.gmra.mrb[0].mxu1 %vm3752_vm1, %v215_v16 }
  0x68   :  { %2631 = vmatpush3.bf16.msra.mxu0 %v3235_v10  ;;  %2468 = vmatprep.mubr.msk.f32.mxu0 %vm3054_vm0, %v3055_v1 }
  0x69   :  { %2632 = vmatprep.subr.bf16.mxu0 %v3053_v0  ;;  %2637 = vmatpush3.bf16.msra.mxu1 %v3235_v10 }
  0x6a   :  { %2638 = vmatprep.subr.bf16.mxu1 %v3053_v0  ;;  %2479 = vmatprep.mubr.msk.f32.mxu1 %vm3054_vm0, %v3055_v1 }
  0x6c   :  { %2634 = vmatpush3.bf16.msra.mxu0 %v3239_v14 }
  0x6d   :  { %2640 = vmatpush3.bf16.msra.mxu1 %v3239_v14  ;;  %2641 = vmatprep.subr.bf16.mxu0 %v3053_v0 }
  0x6e   :  { %2647 = vmatprep.subr.bf16.mxu1 %v3053_v0 }
 0x13a   :  { %v2448_v18 = vpop.f32.mrb[0].mxu0  ;;  %v291_v19 = vpop.f32.mrb[0].mxu1 }
 0x13b   :  { %v208_v20 = vadd.f32 %v2448_v18, %v2275_v17  ;;  %v202_v21 = vpop.f32.mrb[1].mxu0  ;;  %v2459_v22 = vpop.f32.mrb[1].mxu1 }
 0x13c   :  { %v203_v23 = vadd.f32 %v2275_v17, %v202_v21 }
 0x13d   :  { %v218_v24 = vrot.slane %v208_v20, 7  ;;  %v430_v25 = vrot.slane %v208_v20, 1  ;;  %v535_v26 = vrot.slane %v208_v20, 2  ;;  %v640_v27 = vrot.slane %v208_v20, 3 }
 0x13e   :  { %v325_v28 = vrot.slane %v203_v23, 1  ;;  %v428_v29 = vrot.slane %v203_v23, 2  ;;  %v533_v30 = vrot.slane %v203_v23, 3  ;;  %v638_v31 = vrot.slane %v203_v23, 4 }
 0x13f   :  { %v221_v32 = vsel %vm220_vm2, %v203_v23, %v218_v24  ;;  %v743_v33 = vrot.slane %v203_v23, 5  ;;  %v745_v34 = vrot.slane %v208_v20, 4  ;;  %v848_v35 = vrot.slane %v203_v23, 6 }
 0x140   :  { %v295_v36 = vadd.f32 %v291_v19, %v221_v32  ;;  %v327_v37 = vsel %vm220_vm2, %v325_v28, %v208_v20  ;;  %v3268_v38 = vsel %vm220_vm2, %v428_v29, %v430_v25  ;;  %v3271_v39 = vsel %vm220_vm2, %v533_v30, %v535_v26 }
 0x141   :  { %v3274_v40 = vsel %vm220_vm2, %v638_v31, %v640_v27  ;;  %v3277_v41 = vsel %vm220_vm2, %v743_v33, %v745_v34  ;;  %v850_v42 = vrot.slane %v208_v20, 5  ;;  %v953_v43 = vrot.slane %v203_v23, 7 }
 0x142   :  { %2704 = vtanh.f32 %v295_v36  ;;  %v955_v44 = vrot.slane %v208_v20, 6  ;;  %v2279_v49 = vmul.f32 -1.442695, %v295_v36 }
 0x143   :  { %v3280_v45 = vsel %vm220_vm2, %v848_v35, %v850_v42 }
 0x144   :  { %v3283_v46 = vsel %vm220_vm2, %v953_v43, %v955_v44  ;;  %2706 = vpow2.f32 %v2279_v49 }
 0x14c   :  { %v2705_v47 = vpop.eup %2704 }
 0x14d   :  { %309 = vrot.lane.b32.xlu0 %v2705_v47, %s3056_s3 }
 0x14e   :  { %v2707_v50 = vpop.eup %2706 }
 0x14f   :  { %v299_v51 = vadd.f32 1.0, %v2707_v50 }
 0x151   :  { %304 = vrot.lane.b32.xlu0 %v216_v48, %s3057_s17  ;;  %2708 = vrcp.f32 %v299_v51 }
 0x15b   :  { %v2709_v52 = vpop.eup %2708 }
 0x1bf   :  { %v310_v53 = vpop.permute.xlu0 %309 }
 0x1c0   :  { %v312_v54 = vmul.f32 %v2709_v52, %v310_v53 }
 0x1c2   :  { %314 = vrot.lane.b32.xlu1 %v312_v54, %s3057_s17 }
 0x1c3   :  { %v305_v55 = vpop.permute.xlu0 %304 }
 0x1c4   :  { %v307_v56 = vmul.f32 %v2709_v52, %v305_v55 }
 0x234   :  { %v315_v57 = vpop.permute.xlu1 %314 }
 0x235   :  { %v317_v58 = vadd.f32 %v315_v57, %v307_v56 }
 0x237   :  { %2710 = vtanh.f32 %v317_v58 }
 0x241   :  { %v2711_v59 = vpop.eup %2710 }
 0x242   :  { %320 = vrot.lane.b32.xlu1 %v2711_v59, %s3056_s3 }
 0x2b4   :  { %v321_v60 = vpop.permute.xlu1 %320 }
 0x2b5   :  { %v3292_v61 = vmul.f32 %v2709_v52, %v321_v60 }
 0x2b7   :  { %329 = vrot.lane.b32.xlu0 %v3292_v61, %s3057_s17 }
 0x329   :  { %v330_v62 = vpop.permute.xlu0 %329 }
 0x32a   :  { %2469 = vmatmul.mubr.msk.f32.vlgmr.msra.gmra.mrb[2].mxu0 %vm3752_vm1, %v330_v62 }
 0x32b   :  { %2643 = vmatpush3.bf16.msra.mxu0 %v3235_v10  ;;  %2490 = vmatprep.mubr.msk.f32.mxu0 %vm3054_vm0, %v3055_v1 }
 0x32c   :  { %2644 = vmatprep.subr.bf16.mxu0 %v3053_v0 }
 0x32f   :  { %2646 = vmatpush3.bf16.msra.mxu0 %v3239_v14 }
 0x330   :  { %2653 = vmatprep.subr.bf16.mxu0 %v3053_v0 }
 0x3fd   :  { %v399_v63 = vpop.f32.mrb[2].mxu0 }
 0x3fe   :  { %v403_v2 = vadd.f32 %v399_v63, %v327_v37  ;;  %v2470_v3 = vpop.f32.mrb[3].mxu0  ;;  %v1096_v37 = vrot.slane %v3292_v61, 1 }
 0x400   :  { %2712 = vtanh.f32 %v403_v2  ;;  %v2281_v5 = vmul.f32 -1.442695, %v403_v2 }
 0x402   :  { %2714 = vpow2.f32 %v2281_v5 }
 0x40a   :  { %v2713_v4 = vpop.eup %2712 }
 0x40b   :  { %413 = vrot.lane.b32.xlu1 %v2713_v4, %s3056_s3 }
 0x40c   :  { %v2715_v6 = vpop.eup %2714 }
 0x40d   :  { %v407_v7 = vadd.f32 1.0, %v2715_v6 }
 0x40f   :  { %2716 = vrcp.f32 %v407_v7 }
 0x419   :  { %v2717_v8 = vpop.eup %2716 }
 0x41a   :  { %v411_v12 = vmul.f32 %v2717_v8, %v317_v58 }
 0x47d   :  { %v414_v9 = vpop.permute.xlu1 %413 }
 0x47e   :  { %v416_v11 = vmul.f32 %v2717_v8, %v414_v9 }
 0x480   :  { %418 = vrot.lane.b32.xlu0 %v416_v11, %s3057_s17 }
 0x4f2   :  { %v419_v13 = vpop.permute.xlu0 %418 }
 0x4f3   :  { %v421_v15 = vadd.f32 %v419_v13, %v411_v12 }
 0x4f5   :  { %2718 = vtanh.f32 %v421_v15 }
 0x4ff   :  { %v2719_v16 = vpop.eup %2718 }
 0x500   :  { %424 = vrot.lane.b32.xlu1 %v2719_v16, %s3056_s3 }
 0x572   :  { %v425_v17 = vpop.permute.xlu1 %424 }
 0x573   :  { %v427_v18 = vmul.f32 %v2717_v8, %v425_v17 }
 0x575   :  { %434 = vrot.lane.b32.xlu0 %v427_v18, %s3057_s17  ;;  %v1069_v34 = vrot.slane %v427_v18, 7  ;;  %v1110_v44 = vsel %vm220_vm2, %v1096_v37, %v427_v18 }
 0x577   :  { %v1083_v43 = vsel %vm220_vm2, %v3292_v61, %v1069_v34 }
 0x5e7   :  { %v435_v19 = vpop.permute.xlu0 %434 }
 0x5e8   :  { %2480 = vmatmul.mubr.msk.f32.vlgmr.msra.gmra.mrb[2].mxu1 %vm3752_vm1, %v435_v19 }
 0x5e9   :  { %2649 = vmatpush3.bf16.msra.mxu1 %v3235_v10  ;;  %2501 = vmatprep.mubr.msk.f32.mxu1 %vm3054_vm0, %v3055_v1 }
 0x5ea   :  { %2650 = vmatprep.subr.bf16.mxu1 %v3053_v0 }
 0x5ed   :  { %2652 = vmatpush3.bf16.msra.mxu1 %v3239_v14 }
 0x5ee   :  { %2659 = vmatprep.subr.bf16.mxu1 %v3053_v0 }
 0x6bb   :  { %v504_v20 = vpop.f32.mrb[2].mxu1 }
 0x6bc   :  { %v508_v21 = vadd.f32 %v504_v20, %v3268_v38  ;;  %v2481_v22 = vpop.f32.mrb[3].mxu1 }
 0x6be   :  { %2720 = vtanh.f32 %v508_v21  ;;  %v2283_v24 = vmul.f32 -1.442695, %v508_v21 }
 0x6c0   :  { %2722 = vpow2.f32 %v2283_v24 }
 0x6c8   :  { %v2721_v23 = vpop.eup %2720 }
 0x6c9   :  { %518 = vrot.lane.b32.xlu1 %v2721_v23, %s3056_s3 }
 0x6ca   :  { %v2723_v25 = vpop.eup %2722 }
 0x6cb   :  { %v512_v26 = vadd.f32 1.0, %v2723_v25 }
 0x6cd   :  { %2724 = vrcp.f32 %v512_v26 }
 0x6d7   :  { %v2725_v27 = vpop.eup %2724 }
 0x6d8   :  { %v516_v30 = vmul.f32 %v2725_v27, %v421_v15 }
 0x73b   :  { %v519_v28 = vpop.permute.xlu1 %518 }
 0x73c   :  { %v521_v29 = vmul.f32 %v2725_v27, %v519_v28 }
 0x73e   :  { %523 = vrot.lane.b32.xlu0 %v521_v29, %s3057_s17 }
 0x7b0   :  { %v524_v31 = vpop.permute.xlu0 %523 }
 0x7b1   :  { %v526_v32 = vadd.f32 %v524_v31, %v516_v30 }
 0x7b3   :  { %2726 = vtanh.f32 %v526_v32 }
 0x7bd   :  { %v2727_v33 = vpop.eup %2726 }
 0x7be   :  { %529 = vrot.lane.b32.xlu1 %v2727_v33, %s3056_s3 }
 0x830   :  { %v530_v35 = vpop.permute.xlu1 %529 }
 0x831   :  { %v532_v36 = vmul.f32 %v2725_v27, %v530_v35 }
 0x833   :  { %v1071_v38 = vrot.slane %v532_v36, 6  ;;  %v1098_v42 = vrot.slane %v532_v36, 7  ;;  %539 = vrot.lane.b32.xlu0 %v532_v36, %s3057_s17 }
 0x835   :  { %v1085_v47 = vsel %vm1084_vm3, %v1083_v43, %v1071_v38  ;;  %v1111_v48 = vsel %vm1084_vm3, %v1110_v44, %v1098_v42 }
 0x8a5   :  { %v540_v49 = vpop.permute.xlu0 %539 }
 0x8a6   :  { %2491 = vmatmul.mubr.msk.f32.vlgmr.msra.gmra.mrb[4].mxu0 %vm3752_vm1, %v540_v49 }
 0x8a7   :  { %2655 = vmatpush3.bf16.msra.mxu0 %v3235_v10  ;;  %2512 = vmatprep.mubr.msk.f32.mxu0 %vm3054_vm0, %v3055_v1 }
 0x8a8   :  { %2656 = vmatprep.subr.bf16.mxu0 %v3053_v0 }
 0x8ab   :  { %2658 = vmatpush3.bf16.msra.mxu0 %v3239_v14 }
 0x8ac   :  { %2665 = vmatprep.subr.bf16.mxu0 %v3053_v0 }
 0x979   :  { %v609_v50 = vpop.f32.mrb[4].mxu0 }
 0x97a   :  { %v613_v51 = vadd.f32 %v609_v50, %v3271_v39  ;;  %v2492_v52 = vpop.f32.mrb[5].mxu0 }
 0x97c   :  { %2728 = vtanh.f32 %v613_v51  ;;  %v2285_v54 = vmul.f32 -1.442695, %v613_v51 }
 0x97e   :  { %2730 = vpow2.f32 %v2285_v54 }
 0x986   :  { %v2729_v53 = vpop.eup %2728 }
 0x987   :  { %623 = vrot.lane.b32.xlu1 %v2729_v53, %s3056_s3 }
 0x988   :  { %v2731_v55 = vpop.eup %2730 }
 0x989   :  { %v617_v56 = vadd.f32 1.0, %v2731_v55 }
 0x98b   :  { %2732 = vrcp.f32 %v617_v56 }
 0x995   :  { %v2733_v57 = vpop.eup %2732 }
 0x996   :  { %v621_v60 = vmul.f32 %v2733_v57, %v526_v32 }
 0x9f9   :  { %v624_v58 = vpop.permute.xlu1 %623 }
 0x9fa   :  { %v626_v59 = vmul.f32 %v2733_v57, %v624_v58 }
 0x9fc   :  { %628 = vrot.lane.b32.xlu0 %v626_v59, %s3057_s17 }
 0xa6e   :  { %v629_v61 = vpop.permute.xlu0 %628 }
 0xa6f   :  { %v631_v62 = vadd.f32 %v629_v61, %v621_v60 }
 0xa71   :  { %2734 = vtanh.f32 %v631_v62 }
 0xa7b   :  { %v2735_v39 = vpop.eup %2734 }
 0xa7c   :  { %634 = vrot.lane.b32.xlu1 %v2735_v39, %s3056_s3 }
 0xaee   :  { %v635_v63 = vpop.permute.xlu1 %634 }
 0xaef   :  { %v637_v2 = vmul.f32 %v2733_v57, %v635_v63 }
 0xaf1   :  { %v1073_v3 = vrot.slane %v637_v2, 5  ;;  %v1100_v4 = vrot.slane %v637_v2, 6  ;;  %644 = vrot.lane.b32.xlu0 %v637_v2, %s3057_s17 }
 0xaf3   :  { %v1087_v5 = vsel %vm1086_vm4, %v1085_v47, %v1073_v3  ;;  %v1112_v6 = vsel %vm1086_vm4, %v1111_v48, %v1100_v4 }
 0xb63   :  { %v645_v7 = vpop.permute.xlu0 %644 }
 0xb64   :  { %2502 = vmatmul.mubr.msk.f32.vlgmr.msra.gmra.mrb[4].mxu1 %vm3752_vm1, %v645_v7 }
 0xb65   :  { %2661 = vmatpush3.bf16.msra.mxu1 %v3235_v10  ;;  %2523 = vmatprep.mubr.msk.f32.mxu1 %vm3054_vm0, %v3055_v1 }
 0xb66   :  { %2662 = vmatprep.subr.bf16.mxu1 %v3053_v0 }
 0xb69   :  { %2664 = vmatpush3.bf16.msra.mxu1 %v3239_v14 }
 0xc37   :  { %v714_v8 = vpop.f32.mrb[4].mxu1 }
 0xc38   :  { %v718_v9 = vadd.f32 %v714_v8, %v3274_v40  ;;  %v2503_v11 = vpop.f32.mrb[5].mxu1 }
 0xc3a   :  { %2736 = vtanh.f32 %v718_v9  ;;  %v2287_v13 = vmul.f32 -1.442695, %v718_v9 }
 0xc3c   :  { %2738 = vpow2.f32 %v2287_v13 }
 0xc44   :  { %v2737_v12 = vpop.eup %2736 }
 0xc45   :  { %728 = vrot.lane.b32.xlu1 %v2737_v12, %s3056_s3 }
 0xc46   :  { %v2739_v15 = vpop.eup %2738 }
 0xc47   :  { %v722_v16 = vadd.f32 1.0, %v2739_v15 }
 0xc49   :  { %2740 = vrcp.f32 %v722_v16 }
 0xc53   :  { %v2741_v17 = vpop.eup %2740 }
 0xc54   :  { %v726_v20 = vmul.f32 %v2741_v17, %v631_v62 }
 0xcb7   :  { %v729_v18 = vpop.permute.xlu1 %728 }
 0xcb8   :  { %v731_v19 = vmul.f32 %v2741_v17, %v729_v18 }
 0xcba   :  { %733 = vrot.lane.b32.xlu0 %v731_v19, %s3057_s17 }
 0xd2c   :  { %v734_v21 = vpop.permute.xlu0 %733 }
 0xd2d   :  { %v736_v22 = vadd.f32 %v734_v21, %v726_v20 }
 0xd2f   :  { %2742 = vtanh.f32 %v736_v22 }
 0xd39   :  { %v2743_v40 = vpop.eup %2742 }
 0xd3a   :  { %739 = vrot.lane.b32.xlu1 %v2743_v40, %s3056_s3 }
 0xdac   :  { %v740_v23 = vpop.permute.xlu1 %739 }
 0xdad   :  { %v742_v24 = vmul.f32 %v2741_v17, %v740_v23  ;;  %v1118_v23 = vld [vmem:[#allocation8 + $0x8] sm:$0xff] }
 0xdaf   :  { %v1075_v25 = vrot.slane %v742_v24, 4  ;;  %v1102_v26 = vrot.slane %v742_v24, 5  ;;  %749 = vrot.lane.b32.xlu0 %v742_v24, %s3057_s17  ;;  %v1119_v24 = vld [vmem:[#allocation8 + $0x10] sm:$0xff] }
 0xdb1   :  { %v1089_v27 = vsel %vm1088_vm5, %v1087_v5, %v1075_v25  ;;  %v1113_v28 = vsel %vm1088_vm5, %v1112_v6, %v1102_v26  ;;  %v1120_v26 = vld [vmem:[#allocation8 + $0x18] sm:$0xff] }
 0xe21   :  { %v750_v29 = vpop.permute.xlu0 %749 }
 0xe22   :  { %2513 = vmatmul.mubr.msk.f32.vlgmr.msra.gmra.mrb[6].mxu0 %vm3752_vm1, %v750_v29 }
 0xe23   :  { %2667 = vmatpush3.bf16.msra.mxu0 %v3235_v10  ;;  %2534 = vmatprep.mubr.msk.f32.mxu0 %vm3054_vm0, %v3055_v1 }
 0xe24   :  { %2668 = vmatprep.subr.bf16.mxu0 %v3053_v0 }
 0xe27   :  { %2670 = vmatpush3.bf16.msra.mxu0 %v3239_v14 }
 0xef5   :  { %v819_v30 = vpop.f32.mrb[6].mxu0 }
 0xef6   :  { %v823_v31 = vadd.f32 %v819_v30, %v3277_v41  ;;  %v2514_v32 = vpop.f32.mrb[7].mxu0 }
 0xef8   :  { %2744 = vtanh.f32 %v823_v31  ;;  %v2289_v34 = vmul.f32 -1.442695, %v823_v31 }
 0xefa   :  { %2746 = vpow2.f32 %v2289_v34 }
 0xf02   :  { %v2745_v33 = vpop.eup %2744 }
 0xf03   :  { %833 = vrot.lane.b32.xlu1 %v2745_v33, %s3056_s3 }
 0xf04   :  { %v2747_v35 = vpop.eup %2746 }
 0xf05   :  { %v827_v36 = vadd.f32 1.0, %v2747_v35 }
 0xf07   :  { %2748 = vrcp.f32 %v827_v36 }
 0xf11   :  { %v2749_v10 = vpop.eup %2748 }
 0xf12   :  { %v831_v0 = vmul.f32 %v2749_v10, %v736_v22 }
 0xf75   :  { %v834_v37 = vpop.permute.xlu1 %833 }
 0xf76   :  { %v836_v38 = vmul.f32 %v2749_v10, %v834_v37 }
 0xf78   :  { %838 = vrot.lane.b32.xlu0 %v836_v38, %s3057_s17 }
 0xfea   :  { %v839_v14 = vpop.permute.xlu0 %838 }
 0xfeb   :  { %v841_v42 = vadd.f32 %v839_v14, %v831_v0  ;;  %v2294_v0 = vld [vmem:[%s3743_s7] ss:$0 sm:$0xff] }
 0xfed   :  { %2750 = vtanh.f32 %v841_v42 }
 0xff7   :  { %v2751_v41 = vpop.eup %2750 }
 0xff8   :  { %844 = vrot.lane.b32.xlu1 %v2751_v41, %s3056_s3 }
0x106a   :  { %v845_v43 = vpop.permute.xlu1 %844 }
0x106b   :  { %v847_v44 = vmul.f32 %v2749_v10, %v845_v43  ;;  %v1213_v10 = vlaneseq }
0x106d   :  { %v1077_v47 = vrot.slane %v847_v44, 3  ;;  %v1104_v48 = vrot.slane %v847_v44, 4  ;;  %854 = vrot.lane.b32.xlu0 %v847_v44, %s3057_s17  ;;  %v1214_v37 = vand.u32 127, %v1213_v10 }
0x106f   :  { %v1091_v49 = vsel %vm1090_vm6, %v1089_v27, %v1077_v47  ;;  %v1114_v50 = vsel %vm1090_vm6, %v1113_v28, %v1104_v48  ;;  %v2675_v27 = vpack.c.bf16 %v1120_v26, %v1119_v24  ;;  %vm1216_vm9 = vcmp.lt.s32.totalorder %v1214_v37, 4 }
0x1070   :  { %v3386_v38 = vsel %vm1216_vm9, 1.0, %v3055_v1  ;;  %vm1220_vm10 = vcmp.ge.s32.totalorder %v1214_v37, 4  ;;  %vm1221_vm11 = vcmp.lt.s32.totalorder %v1214_v37, 8  ;;  %vm1225_vm12 = vcmp.ge.s32.totalorder %v1214_v37, 8 }
0x1071   :  { %v1255_v14 = vmul.f32 0.5, %v3386_v38  ;;  %vm1226_vm13 = vcmp.lt.s32.totalorder %v1214_v37, 12  ;;  %vm1222_vm14 = vmand %vm1220_vm10, %vm1221_vm11  ;;  %vm1230_vm0 = vcmp.ge.s32.totalorder %v1214_v37, 12  ;;  %vm1231_vm2 = vcmp.lt.s32.totalorder %v1214_v37, 16 }
0x1072   :  { %vm1227_vm15 = vmand %vm1225_vm12, %vm1226_vm13  ;;  %vm1235_vm3 = vcmp.ge.s32.totalorder %v1214_v37, 16  ;;  %vm1236_vm4 = vcmp.lt.s32.totalorder %v1214_v37, 20  ;;  %vm1245_vm9 = vcmp.ge.s32.totalorder %v1214_v37, 24  ;;  %vm3753_vm10 = vcmask 261120  }
0x1073   :  { %vm1232_vm5 = vmand %vm1230_vm0, %vm1231_vm2  ;;  %vm1251_vm0 = vcmp.lt.s32.totalorder %v1214_v37, 32 }
0x1074   :  { %vm1237_vm6 = vmand %vm1235_vm3, %vm1236_vm4 }
0x1075   :  { %vm3754_vm12 = vmmov %vm3753_vm10 }
0x1076   :  { %vm3755_vm13 = vmmov %vm3753_vm10 }
0x1077   :  { %vm3756_vm2 = vmmov %vm3753_vm10 }
0x1078   :  { %vm3757_vm3 = vmmov %vm3756_vm2 }
0x1079   :  { %vm3758_vm4 = vmmov %vm3756_vm2 }
0x10df   :  { %v855_v51 = vpop.permute.xlu0 %854 }
0x10e0   :  { %2524 = vmatmul.mubr.msk.f32.vlgmr.msra.gmra.mrb[6].mxu1 %vm3752_vm1, %v855_v51 }
0x11b3   :  { %v924_v52 = vpop.f32.mrb[6].mxu1 }
0x11b4   :  { %v928_v53 = vadd.f32 %v924_v52, %v3280_v45  ;;  %v2525_v54 = vpop.f32.mrb[7].mxu1 }
0x11b5   :  { %v3413_v54 = vsel %vm1232_vm5, 1.0, %v3055_v1  ;;  %vm3759_vm5 = vmmov %vm3756_vm2 }
0x11b6   :  { %2752 = vtanh.f32 %v928_v53  ;;  %v2291_v56 = vmul.f32 -1.442695, %v928_v53 }
0x11b8   :  { %2754 = vpow2.f32 %v2291_v56  ;;  %v3417_v56 = vsel %vm1237_vm6, 1.0, %v3055_v1  ;;  %vm3760_vm6 = vmmov %vm3756_vm2 }
0x11c0   :  { %v2753_v55 = vpop.eup %2752 }
0x11c1   :  { %938 = vrot.lane.b32.xlu1 %v2753_v55, %s3056_s3 }
0x11c2   :  { %v2755_v57 = vpop.eup %2754 }
0x11c3   :  { %v932_v58 = vadd.f32 1.0, %v2755_v57 }
0x11c5   :  { %2756 = vrcp.f32 %v932_v58  ;;  %v1264_v58 = vmul.f32 0.5, %v3413_v54 }
0x11cf   :  { %v2757_v59 = vpop.eup %2756 }
0x11d0   :  { %v936_v62 = vmul.f32 %v2757_v59, %v841_v42 }
0x1233   :  { %v939_v60 = vpop.permute.xlu1 %938 }
0x1234   :  { %v941_v61 = vmul.f32 %v2757_v59, %v939_v60 }
0x1236   :  { %943 = vrot.lane.b32.xlu0 %v941_v61, %s3057_s17  ;;  %v1267_v61 = vmul.f32 0.5, %v3417_v56 }
0x12a8   :  { %v944_v39 = vpop.permute.xlu0 %943 }
0x12a9   :  { %v946_v63 = vadd.f32 %v944_v39, %v936_v62 }
0x12ab   :  { %2758 = vtanh.f32 %v946_v63 }
0x12b5   :  { %v2759_v45 = vpop.eup %2758 }
0x12b6   :  { %949 = vrot.lane.b32.xlu1 %v2759_v45, %s3056_s3 }
0x1328   :  { %v950_v2 = vpop.permute.xlu1 %949 }
0x1329   :  { %v952_v3 = vmul.f32 %v2757_v59, %v950_v2 }
0x132b   :  { %v1079_v4 = vrot.slane %v952_v3, 2  ;;  %v1106_v5 = vrot.slane %v952_v3, 3  ;;  %959 = vrot.lane.b32.xlu0 %v952_v3, %s3057_s17 }
0x132d   :  { %v1093_v6 = vsel %vm1092_vm7, %v1091_v49, %v1079_v4  ;;  %v1115_v7 = vsel %vm1092_vm7, %v1114_v50, %v1106_v5  ;;  %v3405_v49 = vsel %vm1222_vm14, 1.0, %v3055_v1  ;;  %v3408_v50 = vsel %vm1227_vm15, 1.0, %v3055_v1 }
0x132e   :  { %vm1240_vm7 = vcmp.ge.s32.totalorder %v1214_v37, 20  ;;  %v1258_v51 = vmul.f32 0.5, %v3405_v49  ;;  %v1261_v53 = vmul.f32 0.5, %v3408_v50  ;;  %vm1250_vm15 = vcmp.ge.s32.totalorder %v1214_v37, 28 }
0x139d   :  { %v960_v8 = vpop.permute.xlu0 %959 }
0x139e   :  { %2535 = vmatmul.mubr.msk.f32.vlgmr.msra.gmra.mrb[8].mxu0 %vm3752_vm1, %v960_v8 }
0x1471   :  { %v1029_v9 = vpop.f32.mrb[8].mxu0 }
0x1472   :  { %v1033_v11 = vadd.f32 %v1029_v9, %v3283_v46  ;;  %v2536_v12 = vpop.f32.mrb[9].mxu0  ;;  %v1117_v46 = vld [vmem:[#allocation8] sm:$0xff] }
0x1473   :  { %v2671_v25 = vpack.c.bf16 %v1118_v23, %v1117_v46 }
0x1474   :  { %2760 = vtanh.f32 %v1033_v11  ;;  %v2293_v15 = vmul.f32 -1.442695, %v1033_v11 }
0x1475   :  { %2672 = vmatprep.subr.bf16.mxu1 %v2671_v25 }
0x1476   :  { %2762 = vpow2.f32 %v2293_v15  ;;  %2674 = vmatpush3.bf16.msra.mxu1 %v2671_v25 }
0x1477   :  { %2676 = vmatprep.subr.bf16.mxu1 %v2675_v27 }
0x147a   :  { %2678 = vmatpush3.bf16.msra.mxu1 %v2675_v27 }
0x147e   :  { %v2761_v13 = vpop.eup %2760 }
0x147f   :  { %1043 = vrot.lane.b32.xlu1 %v2761_v13, %s3056_s3 }
0x1480   :  { %v2763_v16 = vpop.eup %2762 }
0x1481   :  { %v1037_v17 = vadd.f32 1.0, %v2763_v16 }
0x1483   :  { %2764 = vrcp.f32 %v1037_v17 }
0x148d   :  { %v2765_v18 = vpop.eup %2764 }
0x148e   :  { %v1041_v21 = vmul.f32 %v2765_v18, %v946_v63 }
0x14f1   :  { %v1044_v19 = vpop.permute.xlu1 %1043 }
0x14f2   :  { %v1046_v20 = vmul.f32 %v2765_v18, %v1044_v19 }
0x14f4   :  { %1048 = vrot.lane.b32.xlu0 %v1046_v20, %s3057_s17 }
0x1566   :  { %v1049_v22 = vpop.permute.xlu0 %1048 }
0x1567   :  { %v3367_v40 = vadd.f32 %v1049_v22, %v1041_v21 }
0x1569   :  { %2766 = vtanh.f32 %v3367_v40 }
0x1573   :  { %v2767_v28 = vpop.eup %2766 }
0x1574   :  { %1054 = vrot.lane.b32.xlu1 %v2767_v28, %s3056_s3 }
0x15e6   :  { %v1055_v29 = vpop.permute.xlu1 %1054 }
0x15e7   :  { %v3371_v30 = vmul.f32 %v2765_v18, %v1055_v29 }
0x15e9   :  { %v1081_v31 = vrot.slane %v3371_v30, 1  ;;  %v1108_v32 = vrot.slane %v3371_v30, 2 }
0x15eb   :  { %v3375_v33 = vsel %vm1094_vm8, %v1093_v6, %v1081_v31  ;;  %v3377_v34 = vsel %vm1094_vm8, %v1115_v7, %v1108_v32  ;;  %vm1241_vm8 = vcmp.lt.s32.totalorder %v1214_v37, 24 }
0x15ec   :  { %1130 = vrot.lane.b32.xlu0 %v3375_v33, %s3057_s17  ;;  %1132 = vrot.lane.b32.xlu1 %v3377_v34, %s3057_s17  ;;  %vm1242_vm11 = vmand %vm1240_vm7, %vm1241_vm8 }
0x15ed   :  { %v3428_v62 = vsel %vm1242_vm11, 1.0, %v3055_v1  ;;  %vm3761_vm7 = vmmov %vm3756_vm2 }
0x15ee   :  { %v1270_v2 = vmul.f32 0.5, %v3428_v62  ;;  %vm3762_vm8 = vmmov %vm3756_vm2 }
0x15ef   :  { %vm3765_vm11 = vmmov %vm3756_vm2 }
0x165e   :  { %v1131_v35 = vpop.permute.xlu0 %1130  ;;  %v1133_v36 = vpop.permute.xlu1 %1132 }
0x165f   :  { %2545 = vmatprep.mubr.msk.f32.mxu1 %vm3752_vm1, %v1131_v35 }
0x1660   :  { %2546 = vmatmul.mubr.msk.f32.vlgmr.msra.gmra.mrb[8].mxu1 %vm3752_vm1, %v1133_v36 }
0x1733   :  { %v2547_v42 = vpop.f32.mrb[8].mxu1 }
0x1734   :  { %v3392_v41 = vadd.f32 %v2547_v42, %v2294_v0  ;;  %v1204_v43 = vpop.f32.mrb[9].mxu1 }
0x1735   :  { %v3394_v44 = vadd.f32 %v2294_v0, %v1204_v43 }
0x1736   :  { %1414 = vrot.lane.b32.xlu1 %v3392_v41, %s3058_s28  ;;  %v1257_v47 = vmul.f32 %v1255_v14, %v3392_v41  ;;  %v1260_v57 = vmul.f32 %v1258_v51, %v3392_v41  ;;  %v1263_v60 = vmul.f32 %v1261_v53, %v3392_v41  ;;  %v1266_v45 = vmul.f32 %v1264_v58, %v3392_v41 }
0x1737   :  { %1280 = vrot.lane.b32.xlu0 %v3394_v44, %s3058_s28  ;;  %v1256_v48 = vmul.f32 %v1255_v14, %v3394_v44  ;;  %v1259_v59 = vmul.f32 %v1258_v51, %v3394_v44  ;;  %v1262_v39 = vmul.f32 %v1261_v53, %v3394_v44  ;;  %v1265_v3 = vmul.f32 %v1264_v58, %v3394_v44 }
0x1738   :  { %2564 = vmatprep.mubr.msk.f32.mxu1 %vm3752_vm1, %v1257_v47  ;;  %v1269_v4 = vmul.f32 %v1267_v61, %v3392_v41  ;;  %v1268_v7 = vmul.f32 %v1267_v61, %v3394_v44  ;;  %v1272_v8 = vmul.f32 %v1270_v2, %v3392_v41  ;;  %v1271_v11 = vmul.f32 %v1270_v2, %v3394_v44 }
0x1739   :  { %2550 = vmatprep.mubr.msk.f32.mxu0 %vm3752_vm1, %v1256_v48  ;;  %vm1246_vm1 = vcmp.lt.s32.totalorder %v1214_v37, 28 }
0x173a   :  { %vm1247_vm14 = vmand %vm1245_vm9, %vm1246_vm1 }
0x173b   :  { %v3433_v63 = vsel %vm1247_vm14, 1.0, %v3055_v1  ;;  %vm1252_vm1 = vmand %vm1250_vm15, %vm1251_vm0 }
0x173c   :  { %v1273_v5 = vmul.f32 0.5, %v3433_v63  ;;  %v3444_v6 = vsel %vm1252_vm1, 1.0, %v3055_v1  ;;  %vm3763_vm9 = vmmov %vm3756_vm2 }
0x173d   :  { %v1276_v9 = vmul.f32 0.5, %v3444_v6  ;;  %vm3768_vm14 = vmmov %vm3756_vm2 }
0x173e   :  { %v1275_v12 = vmul.f32 %v1273_v5, %v3392_v41  ;;  %v1274_v1 = vmul.f32 %v1273_v5, %v3394_v44  ;;  %vm3769_vm15 = vmmov %vm3756_vm2 }
0x173f   :  { %v1278_v13 = vmul.f32 %v1276_v9, %v3392_v41  ;;  %v1277_v15 = vmul.f32 %v1276_v9, %v3394_v44  ;;  %vm3770_vm0 = vmmov %vm3756_vm2 }
0x1740   :  { %vm3772_vm1 = vmmov %vm3770_vm0 }
0x17a8   :  { %v1415_v52 = vpop.permute.xlu1 %1414 }
0x17a9   :  { %2562 = vmatprep.subr.msk.mxu1 %vm3753_vm10, %v1415_v52  ;;  %v1281_v55 = vpop.permute.xlu0 %1280  ;;  %vm3764_vm10 = vmmov %vm3756_vm2 }
0x17aa   :  { %2548 = vmatprep.subr.msk.mxu0 %vm3754_vm12, %v1281_v55  ;;  %2563 = vmatpush3.xpose.msk.msra.mxu1 %vm3755_vm13, %v1415_v52  ;;  %vm3766_vm12 = vmmov %vm3756_vm2 }
0x17ab   :  { %2549 = vmatpush3.xpose.msk.msra.mxu0 %vm3756_vm2, %v1281_v55  ;;  %vm3767_vm13 = vmmov %vm3756_vm2  ;;  %vm1547_vm2 = vcmask 64512  }
0x17ad   :  { %2565 = vmatmul.mubr.msk.f32.vlgmr.msra.gmra.mrb[10].mxu1 %vm3757_vm3, %v1260_v57  ;;  %vm3771_vm3 = vmmov %vm3770_vm0 }
0x17ae   :  { %2551 = vmatmul.mubr.msk.f32.vlgmr.msra.gmra.mrb[10].mxu0 %vm3758_vm4, %v1259_v59  ;;  %2567 = vmatprep.mubr.msk.f32.mxu1 %vm3759_vm5, %v1263_v60  ;;  %vm3773_vm4 = vmmov %vm3770_vm0 }
0x17af   :  { %2553 = vmatprep.mubr.msk.f32.mxu0 %vm3760_vm6, %v1262_v39  ;;  %vm3774_vm5 = vmmov %vm3770_vm0 }
0x17b0   :  { %vm3775_vm6 = vmmov %vm3770_vm0 }
0x17b1   :  { %2568 = vmatmul.mubr.msk.f32.gmra.mrb[12].mxu1 %vm3761_vm7, %v1266_v45  ;;  %vm3776_vm7 = vmmov %vm3770_vm0 }
0x17b2   :  { %2554 = vmatmul.mubr.msk.f32.gmra.mrb[12].mxu0 %vm3762_vm8, %v1265_v3  ;;  %2570 = vmatprep.mubr.msk.f32.mxu1 %vm3763_vm9, %v1269_v4  ;;  %vm1062_vm8 = vcmask 254976  }
0x17b3   :  { %2556 = vmatprep.mubr.msk.f32.mxu0 %vm3764_vm10, %v1268_v7 }
0x17b5   :  { %2571 = vmatmul.mubr.msk.f32.gmra.mrb[14].mxu1 %vm3765_vm11, %v1272_v8 }
0x17b6   :  { %2557 = vmatmul.mubr.msk.f32.gmra.mrb[14].mxu0 %vm3766_vm12, %v1271_v11  ;;  %2573 = vmatprep.mubr.msk.f32.mxu1 %vm3767_vm13, %v1275_v12 }
0x17b7   :  { %2559 = vmatprep.mubr.msk.f32.mxu0 %vm3768_vm14, %v1274_v1 }
0x17b9   :  { %2574 = vmatmul.mubr.msk.f32.gmra.mrb[16].mxu1 %vm3769_vm15, %v1278_v13 }
0x17ba   :  { %2560 = vmatmul.mubr.msk.f32.gmra.mrb[16].mxu0 %vm3770_vm0, %v1277_v15 }
0x1880   :  { %v2566_v16 = vpop.f32.mrb[10].mxu1 }
0x1881   :  { %v2552_v17 = vpop.f32.mrb[10].mxu0  ;;  %v1508_v18 = vpop.f32.mrb[11].mxu1  ;;  %v1575_v19 = vsel %vm1547_vm2, %v2566_v16, -inf }
0x1882   :  { %1576 = vmax.xlane.f32.xlu0 %v1575_v19  ;;  %v1374_v20 = vpop.f32.mrb[11].mxu0  ;;  %v1551_v21 = vsel %vm1547_vm2, %v2552_v17, -inf  ;;  %v1572_v24 = vsel %vm1547_vm2, %v1508_v18, -inf }
0x1883   :  { %1552 = vmax.xlane.f32.xlu1 %v1551_v21  ;;  %v1548_v31 = vsel %vm1547_vm2, %v1374_v20, -inf }
0x1884   :  { %v3466_v22 = vpop.f32.mrb[12].mxu1 }
0x1885   :  { %v3468_v46 = vpop.f32.mrb[12].mxu0  ;;  %v1518_v23 = vpop.f32.mrb[13].mxu1  ;;  %v1581_v0 = vsel %vm1547_vm2, %v3466_v22, -inf }
0x1886   :  { %1573 = vmax.xlane.f32.xlu0 %v1572_v24  ;;  %v1384_v25 = vpop.f32.mrb[13].mxu0  ;;  %v1578_v26 = vsel %vm1547_vm2, %v1518_v23, -inf  ;;  %v1557_v43 = vsel %vm1547_vm2, %v3468_v46, -inf }
0x1887   :  { %1579 = vmax.xlane.f32.xlu1 %v1578_v26  ;;  %v1554_v35 = vsel %vm1547_vm2, %v1384_v25, -inf }
0x1888   :  { %v3472_v27 = vpop.f32.mrb[14].mxu1 }
0x1889   :  { %v3474_v28 = vpop.f32.mrb[14].mxu0  ;;  %v3476_v29 = vpop.f32.mrb[15].mxu1  ;;  %v1587_v48 = vsel %vm1547_vm2, %v3472_v27, -inf }
0x188a   :  { %1549 = vmax.xlane.f32.xlu0 %v1548_v31  ;;  %v3479_v32 = vpop.f32.mrb[15].mxu0  ;;  %v1584_v42 = vsel %vm1547_vm2, %v3476_v29, -inf  ;;  %v1563_v52 = vsel %vm1547_vm2, %v3474_v28, -inf }
0x188b   :  { %1555 = vmax.xlane.f32.xlu1 %v1554_v35  ;;  %v1560_v47 = vsel %vm1547_vm2, %v3479_v32, -inf }
0x188c   :  { %v3482_v36 = vpop.f32.mrb[16].mxu1 }
0x188d   :  { %v3484_v10 = vpop.f32.mrb[16].mxu0  ;;  %v3486_v37 = vpop.f32.mrb[17].mxu1  ;;  %v1593_v57 = vsel %vm1547_vm2, %v3482_v36, -inf }
0x188e   :  { %1582 = vmax.xlane.f32.xlu0 %v1581_v0  ;;  %v3490_v14 = vpop.f32.mrb[17].mxu0  ;;  %v1590_v53 = vsel %vm1547_vm2, %v3486_v37, -inf  ;;  %v1569_v55 = vsel %vm1547_vm2, %v3484_v10, -inf }
0x188f   :  { %1585 = vmax.xlane.f32.xlu1 %v1584_v42  ;;  %v1566_v51 = vsel %vm1547_vm2, %v3490_v14, -inf }
0x1892   :  { %1558 = vmax.xlane.f32.xlu0 %v1557_v43 }
0x1893   :  { %1561 = vmax.xlane.f32.xlu1 %v1560_v47 }
0x1896   :  { %1588 = vmax.xlane.f32.xlu0 %v1587_v48 }
0x1897   :  { %1567 = vmax.xlane.f32.xlu1 %v1566_v51 }
0x189a   :  { %1564 = vmax.xlane.f32.xlu0 %v1563_v52 }
0x189b   :  { %1591 = vmax.xlane.f32.xlu1 %v1590_v53 }
0x189e   :  { %1570 = vmax.xlane.f32.xlu0 %v1569_v55 }
0x18a2   :  { %1594 = vmax.xlane.f32.xlu0 %v1593_v57 }
0x190f   :  { %v1577_v58 = vpop.xlane.xlu0 %1576 }
0x1910   :  { %v1605_v59 = vsub.f32 %v2566_v16, %v1577_v58  ;;  %v1553_v60 = vpop.xlane.xlu1 %1552 }
0x1911   :  { %v1597_v61 = vsub.f32 %v2552_v17, %v1553_v60 }
0x1912   :  { %v1630_v39 = vmul.f32 1.442695, %v1605_v59 }
0x1913   :  { %v1614_v45 = vmul.f32 1.442695, %v1597_v61  ;;  %v1574_v2 = vpop.xlane.xlu0 %1573 }
0x1914   :  { %2768 = vpow2.f32 %v1630_v39  ;;  %v1604_v3 = vsub.f32 %v1508_v18, %v1574_v2  ;;  %v1580_v4 = vpop.xlane.xlu1 %1579 }
0x1915   :  { %2770 = vpow2.f32 %v1614_v45  ;;  %v1606_v7 = vsub.f32 %v1518_v23, %v1580_v4 }
0x1916   :  { %v1628_v5 = vmul.f32 1.442695, %v1604_v3 }
0x1917   :  { %v1550_v8 = vpop.xlane.xlu0 %1549  ;;  %v1632_v12 = vmul.f32 1.442695, %v1606_v7 }
0x1918   :  { %2772 = vpow2.f32 %v1628_v5  ;;  %v1596_v9 = vsub.f32 %v1374_v20, %v1550_v8  ;;  %v1556_v11 = vpop.xlane.xlu1 %1555 }
0x1919   :  { %v1598_v13 = vsub.f32 %v1384_v25, %v1556_v11 }
0x191a   :  { %v1612_v1 = vmul.f32 1.442695, %v1596_v9 }
0x191b   :  { %v1583_v15 = vpop.xlane.xlu0 %1582  ;;  %v1616_v18 = vmul.f32 1.442695, %v1598_v13 }
0x191c   :  { %2774 = vpow2.f32 %v1612_v1  ;;  %v1607_v16 = vsub.f32 %v3466_v22, %v1583_v15  ;;  %v1586_v17 = vpop.xlane.xlu1 %1585 }
0x191d   :  { %2776 = vpow2.f32 %v1632_v12  ;;  %v1608_v24 = vsub.f32 %v3476_v29, %v1586_v17 }
0x191e   :  { %v3511_v19 = vpop.eup %2768  ;;  %v1634_v21 = vmul.f32 1.442695, %v1607_v16 }
0x191f   :  { %v1559_v23 = vpop.xlane.xlu0 %1558  ;;  %v1671_v20 = vsel %vm1547_vm2, %v3511_v19, 0.0  ;;  %v3516_v26 = vpop.eup %2770  ;;  %v1636_v35 = vmul.f32 1.442695, %v1608_v24 }
0x1920   :  { %2778 = vpow2.f32 %v1634_v21  ;;  %v1599_v25 = vsub.f32 %v3468_v46, %v1559_v23  ;;  %v1562_v31 = vpop.xlane.xlu1 %1561  ;;  %1672 = vadd.xlane.f32.xlu0 %v1671_v20  ;;  %v1647_v29 = vsel %vm1547_vm2, %v3516_v26, 0.0 }
0x1921   :  { %2780 = vpow2.f32 %v1616_v18  ;;  %v1600_v42 = vsub.f32 %v3479_v32, %v1562_v31 }
0x1922   :  { %v3519_v22 = vpop.eup %2772  ;;  %v1618_v0 = vmul.f32 1.442695, %v1599_v25 }
0x1923   :  { %v1589_v43 = vpop.xlane.xlu0 %1588  ;;  %v1668_v47 = vsel %vm1547_vm2, %v3519_v22, 0.0  ;;  %v1620_v52 = vmul.f32 1.442695, %v1600_v42 }
0x1924   :  { %2782 = vpow2.f32 %v1618_v0  ;;  %v1609_v48 = vsub.f32 %v3472_v27, %v1589_v43  ;;  %1648 = vadd.xlane.f32.xlu0 %v1647_v29  ;;  %1669 = vadd.xlane.f32.xlu1 %v1668_v47  ;;  %v1568_v46 = vpop.xlane.xlu1 %1567 }
0x1925   :  { %2784 = vpow2.f32 %v1636_v35  ;;  %v1602_v61 = vsub.f32 %v3490_v14, %v1568_v46 }
0x1926   :  { %v3527_v51 = vpop.eup %2774  ;;  %v1638_v53 = vmul.f32 1.442695, %v1609_v48 }
0x1927   :  { %v1565_v55 = vpop.xlane.xlu0 %1564  ;;  %v1644_v32 = vsel %vm1547_vm2, %v3527_v51, 0.0  ;;  %v3531_v57 = vpop.eup %2776 }
0x1928   :  { %2786 = vpow2.f32 %v1638_v53  ;;  %v1601_v58 = vsub.f32 %v3474_v28, %v1565_v55  ;;  %1645 = vadd.xlane.f32.xlu1 %v1644_v32  ;;  %v1592_v59 = vpop.xlane.xlu1 %1591  ;;  %v1674_v4 = vsel %vm1547_vm2, %v3531_v57, 0.0 }
0x1929   :  { %v1610_v27 = vsub.f32 %v3486_v37, %v1592_v59  ;;  %2788 = vpow2.f32 %v1620_v52  ;;  %v1624_v37 = vmul.f32 1.442695, %v1602_v61 }
0x192a   :  { %v3535_v60 = vpop.eup %2778  ;;  %v1622_v39 = vmul.f32 1.442695, %v1601_v58 }
0x192b   :  { %v1640_v45 = vmul.f32 1.442695, %v1610_v27  ;;  %v1571_v2 = vpop.xlane.xlu0 %1570  ;;  %v1677_v3 = vsel %vm1547_vm2, %v3535_v60, 0.0  ;;  %v3542_v5 = vpop.eup %2780 }
0x192c   :  { %2790 = vpow2.f32 %v1622_v39  ;;  %1678 = vadd.xlane.f32.xlu0 %v1677_v3  ;;  %1675 = vadd.xlane.f32.xlu1 %v1674_v4  ;;  %v1603_v14 = vsub.f32 %v3484_v10, %v1571_v2  ;;  %v1650_v9 = vsel %vm1547_vm2, %v3542_v5, 0.0 }
0x192d   :  { %2792 = vpow2.f32 %v1640_v45 }
0x192e   :  { %v3544_v28 = vpop.eup %2782  ;;  %2794 = vpow2.f32 %v1624_v37  ;;  %v1626_v13 = vmul.f32 1.442695, %v1603_v14 }
0x192f   :  { %v1595_v7 = vpop.xlane.xlu0 %1594  ;;  %v1653_v8 = vsel %vm1547_vm2, %v3544_v28, 0.0  ;;  %v3551_v11 = vpop.eup %2784 }
0x1930   :  { %v1611_v12 = vsub.f32 %v3482_v36, %v1595_v7  ;;  %1654 = vadd.xlane.f32.xlu0 %v1653_v8  ;;  %1651 = vadd.xlane.f32.xlu1 %v1650_v9  ;;  %v1680_v16 = vsel %vm1547_vm2, %v3551_v11, 0.0 }
0x1932   :  { %v3554_v1 = vpop.eup %2786  ;;  %v1642_v15 = vmul.f32 1.442695, %v1611_v12 }
0x1933   :  { %v1683_v10 = vsel %vm1547_vm2, %v3554_v1, 0.0  ;;  %v3560_v17 = vpop.eup %2788 }
0x1934   :  { %2796 = vpow2.f32 %v1642_v15  ;;  %1684 = vadd.xlane.f32.xlu0 %v1683_v10  ;;  %1681 = vadd.xlane.f32.xlu1 %v1680_v16  ;;  %v1656_v21 = vsel %vm1547_vm2, %v3560_v17, 0.0 }
0x1935   :  { %2798 = vpow2.f32 %v1626_v13 }
0x1936   :  { %v3562_v18 = vpop.eup %2790 }
0x1937   :  { %v1659_v36 = vsel %vm1547_vm2, %v3562_v18, 0.0  ;;  %v3568_v24 = vpop.eup %2792 }
0x1938   :  { %1660 = vadd.xlane.f32.xlu0 %v1659_v36  ;;  %1657 = vadd.xlane.f32.xlu1 %v1656_v21  ;;  %v1686_v23 = vsel %vm1547_vm2, %v3568_v24, 0.0  ;;  %v3572_v20 = vpop.eup %2794 }
0x1939   :  { %v1662_v35 = vsel %vm1547_vm2, %v3572_v20, 0.0 }
0x193c   :  { %1687 = vadd.xlane.f32.xlu1 %v1686_v23 }
0x193e   :  { %v3574_v25 = vpop.eup %2796 }
0x193f   :  { %v1689_v31 = vsel %vm1547_vm2, %v3574_v25, 0.0  ;;  %v3580_v0 = vpop.eup %2798 }
0x1940   :  { %1690 = vadd.xlane.f32.xlu0 %v1689_v31  ;;  %1663 = vadd.xlane.f32.xlu1 %v1662_v35  ;;  %v1665_v42 = vsel %vm1547_vm2, %v3580_v0, 0.0 }
0x1944   :  { %1666 = vadd.xlane.f32.xlu0 %v1665_v42 }
0x1951   :  { %1742 = vrot.lane.b32.xlu1 %v3394_v44, %s3056_s3 }
0x195a   :  { %1874 = vrot.lane.b32.xlu0 %v3392_v41, %s3056_s3 }
0x19ad   :  { %v1673_v43 = vpop.xlane.xlu0 %1672 }
0x19b1   :  { %v1670_v29 = vpop.xlane.xlu1 %1669  ;;  %v1649_v47 = vpop.xlane.xlu0 %1648 }
0x19b2   :  { %2800 = vrcp.f32 %v1670_v29 }
0x19b5   :  { %v1646_v48 = vpop.xlane.xlu1 %1645 }
0x19b6   :  { %2802 = vrcp.f32 %v1646_v48 }
0x19b7   :  { %2804 = vrcp.f32 %v1673_v43 }
0x19b9   :  { %v1679_v46 = vpop.xlane.xlu0 %1678  ;;  %v1676_v52 = vpop.xlane.xlu1 %1675 }
0x19ba   :  { %2806 = vrcp.f32 %v1676_v52 }
0x19bb   :  { %2808 = vrcp.f32 %v1649_v47 }
0x19bc   :  { %v2801_v53 = vpop.eup %2800 }
0x19bd   :  { %v1655_v55 = vpop.xlane.xlu0 %1654  ;;  %v1652_v32 = vpop.xlane.xlu1 %1651  ;;  %v1716_v58 = vmul.f32 %v2801_v53, %v3519_v22 }
0x19be   :  { %2810 = vrcp.f32 %v1652_v32 }
0x19bf   :  { %2592 = vmatprep.mubr.msk.f32.mxu1 %vm1547_vm2, %v1716_v58  ;;  %2812 = vrcp.f32 %v1679_v46 }
0x19c0   :  { %v2803_v44 = vpop.eup %2802 }
0x19c1   :  { %v1682_v41 = vpop.xlane.xlu1 %1681  ;;  %v1708_v59 = vmul.f32 %v2803_v44, %v3527_v51  ;;  %v1685_v27 = vpop.xlane.xlu0 %1684 }
0x19c2   :  { %2814 = vrcp.f32 %v1682_v41  ;;  %v2805_v61 = vpop.eup %2804 }
0x19c3   :  { %2578 = vmatprep.mubr.msk.f32.mxu0 %vm1547_vm2, %v1708_v59  ;;  %2816 = vrcp.f32 %v1655_v55  ;;  %v1717_v2 = vmul.f32 %v2805_v61, %v3511_v19 }
0x19c4   :  { %v2807_v45 = vpop.eup %2806 }
0x19c5   :  { %v1658_v39 = vpop.xlane.xlu1 %1657  ;;  %v2809_v22 = vpop.eup %2808  ;;  %v1718_v37 = vmul.f32 %v2807_v45, %v3531_v57  ;;  %v1725_v51 = vadd.f32 %v1717_v2, %v1716_v58  ;;  %v2037_v45 = vld [vmem:[#allocation10 + $0x8] sm:$0xff] }
0x19c6   :  { %2818 = vrcp.f32 %v1658_v39  ;;  %v1661_v3 = vpop.xlane.xlu0 %1660  ;;  %v1709_v9 = vmul.f32 %v2809_v22, %v3516_v26 }
0x19c7   :  { %2820 = vrcp.f32 %v1685_v27  ;;  %v1727_v10 = vadd.f32 %v1725_v51, %v1718_v37 }
0x19c8   :  { %v2811_v14 = vpop.eup %2810  ;;  %v1724_v16 = vadd.f32 %v1709_v9, %v1708_v59 }
0x19c9   :  { %v1688_v4 = vpop.xlane.xlu1 %1687  ;;  %v2813_v7 = vpop.eup %2812  ;;  %v1710_v15 = vmul.f32 %v2811_v14, %v3542_v5 }
0x19ca   :  { %2822 = vrcp.f32 %v1688_v4  ;;  %v1719_v19 = vmul.f32 %v2813_v7, %v3535_v60 }
0x19cb   :  { %2824 = vrcp.f32 %v1661_v3  ;;  %v1726_v35 = vadd.f32 %v1724_v16, %v1710_v15 }
0x19cc   :  { %v2815_v8 = vpop.eup %2814  ;;  %v1729_v42 = vadd.f32 %v1727_v10, %v1719_v19 }
0x19cd   :  { %v1691_v12 = vpop.xlane.xlu0 %1690  ;;  %v1664_v13 = vpop.xlane.xlu1 %1663  ;;  %v1720_v57 = vmul.f32 %v2815_v8, %v3551_v11 }
0x19ce   :  { %2826 = vrcp.f32 %v1691_v12  ;;  %v2817_v36 = vpop.eup %2816 }
0x19cf   :  { %2828 = vrcp.f32 %v1664_v13  ;;  %v1711_v26 = vmul.f32 %v2817_v36, %v3544_v28  ;;  %v1731_v29 = vadd.f32 %v1729_v42, %v1720_v57 }
0x19d0   :  { %v2819_v21 = vpop.eup %2818 }
0x19d1   :  { %v1667_v23 = vpop.xlane.xlu0 %1666  ;;  %v1743_v31 = vpop.permute.xlu1 %1742  ;;  %v1712_v5 = vmul.f32 %v2819_v21, %v3560_v17  ;;  %v1728_v11 = vadd.f32 %v1726_v35, %v1711_v26 }
0x19d2   :  { %v2821_v43 = vpop.eup %2820  ;;  %2830 = vrcp.f32 %v1667_v23  ;;  %2576 = vmatprep.subr.mxu0 %v1743_v31 }
0x19d3   :  { %2577 = vmatpush3.msra.mxu0 %v1743_v31  ;;  %v1721_v48 = vmul.f32 %v2821_v43, %v3554_v1  ;;  %v1730_v53 = vadd.f32 %v1728_v11, %v1712_v5 }
0x19d4   :  { %v2823_v47 = vpop.eup %2822  ;;  %2579 = vmatmul.mubr.msk.f32.vlgmr.msra.gmra.mrb[18].mxu0 %vm1547_vm2, %v1709_v9 }
0x19d5   :  { %v1875_v60 = vpop.permute.xlu0 %1874  ;;  %2581 = vmatprep.mubr.msk.f32.mxu0 %vm1547_vm2, %v1710_v15  ;;  %v1722_v46 = vmul.f32 %v2823_v47, %v3568_v24  ;;  %v2825_v52 = vpop.eup %2824  ;;  %v1733_v55 = vadd.f32 %v1731_v29, %v1721_v48 }
0x19d6   :  { %2590 = vmatprep.subr.mxu1 %v1875_v60  ;;  %v1713_v32 = vmul.f32 %v2825_v52, %v3562_v18 }
0x19d7   :  { %2591 = vmatpush3.msra.mxu1 %v1875_v60  ;;  %v1735_v1 = vadd.f32 %v1733_v55, %v1722_v46 }
0x19d8   :  { %v2827_v28 = vpop.eup %2826  ;;  %2582 = vmatmul.mubr.msk.f32.gmra.mrb[20].mxu0 %vm1547_vm2, %v1711_v26  ;;  %2593 = vmatmul.mubr.msk.f32.vlgmr.msra.gmra.mrb[18].mxu1 %vm1547_vm2, %v1717_v2  ;;  %v1732_v44 = vadd.f32 %v1730_v53, %v1713_v32  ;;  %v2039_v2 = vld [vmem:[#allocation10 + $0x18] sm:$0xff] }
0x19d9   :  { %v2829_v17 = vpop.eup %2828  ;;  %2584 = vmatprep.mubr.msk.f32.mxu0 %vm1547_vm2, %v1712_v5  ;;  %2595 = vmatprep.mubr.msk.f32.mxu1 %vm1547_vm2, %v1718_v37  ;;  %v1723_v24 = vmul.f32 %v2827_v28, %v3574_v25  ;;  %v2036_v25 = vld [vmem:[#allocation10] sm:$0xff] }
0x19da   :  { %v1714_v58 = vmul.f32 %v2829_v17, %v3572_v20  ;;  %v2679_v22 = vpack.c.bf16 %v2037_v45, %v2036_v25 }
0x19db   :  { %v1737_v41 = vadd.f32 %v1735_v1, %v1723_v24 }
0x19dc   :  { %v2831_v59 = vpop.eup %2830  ;;  %2585 = vmatmul.mubr.msk.f32.gmra.mrb[22].mxu0 %vm1547_vm2, %v1713_v32  ;;  %2596 = vmatmul.mubr.msk.f32.gmra.mrb[20].mxu1 %vm1547_vm2, %v1719_v19  ;;  %v1734_v27 = vadd.f32 %v1732_v44, %v1714_v58 }
0x19dd   :  { %2587 = vmatprep.mubr.msk.f32.mxu0 %vm1547_vm2, %v1714_v58  ;;  %2598 = vmatprep.mubr.msk.f32.mxu1 %vm1547_vm2, %v1720_v57  ;;  %v1715_v61 = vmul.f32 %v2831_v59, %v3580_v0  ;;  %v1739_v18 = vmul.f32 0.125, %v1737_v41  ;;  %v2038_v0 = vld [vmem:[#allocation10 + $0x10] sm:$0xff] }
0x19de   :  { %2680 = vmatprep.subr.bf16.mxu0 %v2679_v22  ;;  %v2683_v3 = vpack.c.bf16 %v2039_v2, %v2038_v0 }
0x19df   :  { %v1736_v39 = vadd.f32 %v1734_v27, %v1715_v61  ;;  %1741 = vst.msk [vmem:[#allocation15 + $0x8] sm:$0xff] %vm1547_vm2, %v1739_v18  ;;  %2682 = vmatpush3.bf16.msra.mxu0 %v2679_v22 }
0x19e0   :  { %2588 = vmatmul.mubr.msk.f32.gmra.mrb[24].mxu0 %vm1547_vm2, %v1715_v61  ;;  %2599 = vmatmul.mubr.msk.f32.gmra.mrb[22].mxu1 %vm1547_vm2, %v1721_v48 }
0x19e1   :  { %2601 = vmatprep.mubr.msk.f32.mxu1 %vm1547_vm2, %v1722_v46  ;;  %v1738_v20 = vmul.f32 0.125, %v1736_v39  ;;  %2684 = vmatprep.subr.bf16.mxu0 %v2683_v3 }
0x19e3   :  { %1740 = vst.msk [vmem:[#allocation15] sm:$0xff] %vm1547_vm2, %v1738_v20  ;;  %2686 = vmatpush3.bf16.msra.mxu0 %v2683_v3 }
0x19e4   :  { %2602 = vmatmul.mubr.msk.f32.gmra.mrb[24].mxu1 %vm1547_vm2, %v1723_v24 }
0x1aa7   :  { %v2580_v4 = vpop.f32.mrb[18].mxu0 }
0x1aa8   :  { %v2008_v37 = vmul.f32 %v2580_v4, %v3405_v49  ;;  %v1835_v14 = vpop.f32.mrb[19].mxu0 }
0x1aa9   :  { %v2006_v51 = vmul.f32 %v3386_v38, %v1835_v14 }
0x1aab   :  { %v2010_v7 = vadd.f32 %v2008_v37, %v2006_v51  ;;  %v2583_v8 = vpop.f32.mrb[20].mxu0  ;;  %v2594_v9 = vpop.f32.mrb[18].mxu1 }
0x1aac   :  { %v2009_v12 = vmul.f32 %v2594_v9, %v3405_v49  ;;  %v1845_v13 = vpop.f32.mrb[21].mxu0  ;;  %v1967_v15 = vpop.f32.mrb[19].mxu1  ;;  %v2016_v19 = vmul.f32 %v2583_v8, %v3413_v54 }
0x1aad   :  { %v2012_v10 = vmul.f32 %v3408_v50, %v1845_v13  ;;  %v2007_v16 = vmul.f32 %v3386_v38, %v1967_v15  ;;  %v2343_v15 = vld [vmem:[%s3747_s11] ss:$0 sm:$0xff] }
0x1aaf   :  { %v2014_v57 = vadd.f32 %v2012_v10, %v2010_v7  ;;  %v2011_v36 = vadd.f32 %v2009_v12, %v2007_v16  ;;  %v2586_v21 = vpop.f32.mrb[22].mxu0  ;;  %v2597_v23 = vpop.f32.mrb[20].mxu1  ;;  %v2342_v10 = vld [vmem:[%s3746_s10] ss:$0 sm:$0xff]  ;;  %s3059_s10 = smov [#allocation12]  }
0x1ab0   :  { %v1855_v31 = vpop.f32.mrb[23].mxu0  ;;  %v1977_v35 = vpop.f32.mrb[21].mxu1  ;;  %v2024_v49 = vmul.f32 %v2586_v21, %v3428_v62  ;;  %v2017_v5 = vmul.f32 %v2597_v23, %v3413_v54  ;;  %s2231_s11 = sshll.u32 %s3059_s10, 4  ;;  %s2232_s11 = int_to_ptr.vmem [resolvable:$true] %s2231_s11 }
0x1ab1   :  { %v2018_v42 = vadd.f32 %v2016_v19, %v2014_v57  ;;  %v2020_v43 = vmul.f32 %v3417_v56, %v1855_v31  ;;  %v2013_v26 = vmul.f32 %v3408_v50, %v1977_v35  ;;  %s2946_s29 = scalar_lea.vmem %s2232_s11, 32  ;;  %p2951_p13 = scmp.lt.s32.totalorder %s2232_s11, %s2232_s11 }
0x1ab2   :  { %p2947_p12 = scmp.ne.s32.totalorder %s2232_s11, %s2946_s29  ;;  %p2952_p0 = scmp.lt.s32.totalorder %s2946_s29, %s2946_s29 }
0x1ab3   :  { %v2022_v29 = vadd.f32 %v2020_v43, %v2018_v42  ;;  %v2015_v47 = vadd.f32 %v2013_v26, %v2011_v36  ;;  %v2589_v38 = vpop.f32.mrb[24].mxu0  ;;  %v2600_v60 = vpop.f32.mrb[22].mxu1 }
0x1ab4   :  { %v1865_v11 = vpop.f32.mrb[25].mxu0  ;;  %v1987_v48 = vpop.f32.mrb[23].mxu1  ;;  %v2032_v28 = vmul.f32 %v2589_v38, %v3444_v6  ;;  %v2025_v50 = vmul.f32 %v2600_v60, %v3428_v62  ;;  %p2953_p1 = por %p2952_p0, %p2951_p13 }
0x1ab5   :  { %v2026_v46 = vadd.f32 %v2024_v49, %v2022_v29  ;;  %v2028_v52 = vmul.f32 %v3433_v63, %v1865_v11  ;;  %v2019_v53 = vadd.f32 %v2017_v5, %v2015_v47  ;;  %v2021_v55 = vmul.f32 %v3417_v56, %v1987_v48  ;;  %v2339_v56 = vld [vmem:[%s3745_s9] ss:$0 sm:$0xff] }
0x1ab6   :  { %p2954_p2 = pnand %p2953_p1, %p2947_p12 }
0x1ab7   :  { %v2030_v17 = vadd.f32 %v2028_v52, %v2026_v46  ;;  %v2023_v32 = vadd.f32 %v2021_v55, %v2019_v53  ;;  %v2603_v1 = vpop.f32.mrb[24].mxu1 }
0x1ab8   :  { %v1997_v54 = vpop.f32.mrb[25].mxu1  ;;  %v2033_v41 = vmul.f32 %v2603_v1, %v3444_v6 }
0x1ab9   :  { %v2034_v24 = vadd.f32 %v2032_v28, %v2030_v17  ;;  %v2027_v58 = vadd.f32 %v2025_v50, %v2023_v32  ;;  %v2029_v44 = vmul.f32 %v3433_v63, %v1997_v54 }
0x1abb   :  { %v2031_v59 = vadd.f32 %v2029_v44, %v2027_v58  ;;  %2612 = vmatprep.mubr.msk.f32.mxu0 %vm3771_vm3, %v2034_v24 }
0x1abd   :  { %v2035_v27 = vadd.f32 %v2033_v41, %v2031_v59 }
0x1abf   :  { %2613 = vmatmul.mubr.msk.f32.vlgmr.msra.gmra.mrb[26].mxu0 %vm3772_vm1, %v2035_v27 }
0x1b92   :  { %v2614_v62 = vpop.f32.mrb[26].mxu0 }
0x1b93   :  { %v2119_v61 = vpop.f32.mrb[27].mxu0  ;;  %v2125_v39 = vadd.f32 %v2614_v62, %v2339_v56 }
0x1b94   :  { %v2120_v18 = vadd.f32 %v2339_v56, %v2119_v61 }
0x1b96   :  { %2130 = vrot.lane.b32.xlu1 %v2120_v18, %s3058_s28 }
0x1b9a   :  { %2132 = vrot.lane.b32.xlu1 %v2125_v39, %s3058_s28 }
0x1c08   :  { %v2131_v63 = vpop.permute.xlu1 %2130 }
0x1c09   :  { %v2136_v6 = vadd.f32 %v2131_v63, %v3375_v33 }
0x1c0b   :  { %2140 = vrot.lane.b32.xlu0 %v2136_v6, %s3057_s17 }
0x1c0c   :  { %v2133_v20 = vpop.permute.xlu1 %2132 }
0x1c0d   :  { %v2137_v25 = vadd.f32 %v2133_v20, %v3377_v34 }
0x1c0f   :  { %2142 = vrot.lane.b32.xlu1 %v2137_v25, %s3057_s17 }
0x1c7d   :  { %v2141_v45 = vpop.permute.xlu0 %2140 }
0x1c7e   :  { %v2146_v22 = vsel %vm3773_vm4, %v2141_v45, 0.0 }
0x1c7f   :  { %2147 = vadd.xlane.f32.xlu0 %v2146_v22 }
0x1c81   :  { %v2143_v0 = vpop.permute.xlu1 %2142 }
0x1c82   :  { %v2149_v2 = vsel %vm3774_vm5, %v2143_v0, 0.0 }
0x1c83   :  { %2150 = vadd.xlane.f32.xlu1 %v2149_v2 }
0x1d0c   :  { %v2148_v3 = vpop.xlane.xlu0 %2147 }
0x1d0d   :  { %v2153_v4 = vmul.f32 0.03125, %v2148_v3 }
0x1d0f   :  { %v2155_v37 = vsub.f32 %v2136_v6, %v2153_v4 }
0x1d10   :  { %v2151_v14 = vpop.xlane.xlu1 %2150 }
0x1d11   :  { %v2154_v33 = vmul.f32 0.03125, %v2151_v14  ;;  %v2157_v51 = vmul.f32 %v2155_v37, %v2155_v37 }
0x1d13   :  { %v2156_v7 = vsub.f32 %v2137_v25, %v2154_v33  ;;  %2161 = vrot.lane.b32.xlu0 %v2157_v51, %s3057_s17 }
0x1d15   :  { %v2158_v34 = vmul.f32 %v2156_v7, %v2156_v7 }
0x1d17   :  { %2163 = vrot.lane.b32.xlu1 %v2158_v34, %s3057_s17 }
0x1d85   :  { %v2162_v8 = vpop.permute.xlu0 %2161 }
0x1d86   :  { %v2167_v9 = vsel %vm3775_vm6, %v2162_v8, 0.0 }
0x1d87   :  { %2168 = vadd.xlane.f32.xlu0 %v2167_v9 }
0x1d89   :  { %v2164_v12 = vpop.permute.xlu1 %2163 }
0x1d8a   :  { %v2170_v13 = vsel %vm3776_vm7, %v2164_v12, 0.0 }
0x1d8b   :  { %2171 = vadd.xlane.f32.xlu1 %v2170_v13 }
0x1d9c   :  { %2198 = vrot.lane.b32.xlu1 %v2343_v15, %s3058_s28 }
0x1d9d   :  { %2187 = vrot.lane.b32.xlu0 %v2342_v10, %s3058_s28 }
0x1da0   :  { %1065 = vrot.lane.b32.xlu1 %v3367_v40, %s3058_s28 }
0x1da1   :  { %1059 = vrot.lane.b32.xlu0 %v3371_v30, %s3057_s17 }
0x1e14   :  { %v2169_v16 = vpop.xlane.xlu0 %2168 }
0x1e15   :  { %v2173_v19 = vmul.f32 0.03125, %v2169_v16 }
0x1e17   :  { %v2175_v57 = vadd.f32 1e-05, %v2173_v19 }
0x1e18   :  { %v3667_v36 = vpop.permute.xlu0 %2187  ;;  %v2172_v21 = vpop.xlane.xlu1 %2171 }
0x1e19   :  { %2832 = vrsqrt.f32 %v2175_v57  ;;  %v2174_v23 = vmul.f32 0.03125, %v2172_v21 }
0x1e1b   :  { %v2176_v31 = vadd.f32 1e-05, %v2174_v23 }
0x1e1c   :  { %v1060_v35 = vpop.permute.xlu0 %1059  ;;  %v2199_v42 = vpop.permute.xlu1 %2198 }
0x1e1d   :  { %2834 = vrsqrt.f32 %v2176_v31  ;;  %1063 = vst.msk [vmem:[#allocation12] sm:$0x3] %vm1062_vm8, %v1060_v35 }
0x1e20   :  { %v1066_v43 = vpop.permute.xlu1 %1065 }
0x1e21   :  { %1068 = vst.msk [vmem:[#allocation14] sm:$0x3] %vm1062_vm8, %v1066_v43 }
0x1e23   :  { %v2833_v40 = vpop.eup %2832 }
0x1e24   :  { %v2179_v30 = vmul.f32 %v2833_v40, %v2155_v37 }
0x1e25   :  { %2957 = shalt.err (!%p2954_p2)
}
0x1e26   :  { %s2958_s23 = scalar_lea.hbm %s3749_s13, 32 }
0x1e27   :  { %p2959_p3 = scmp.ne.s32.totalorder %s3749_s13, %s2958_s23  ;;  %p2962_p4 = scmp.lt.u32.totalorder %s2958_s23, %s3749_s13 }
0x1e29   :  { %p2964_p5 = pnand %p2962_p4, %p2959_p3 }
0x1e2b   :  { %2967 = shalt.err (!%p2964_p5)
}
0x1e2c   :  { %2234 = dma.vmem_to_hbm [thread:$0]  %s2232_s11, 32, %s3749_s13, [#allocation13]   ;;  %v2190_v26 = vmul.f32 %v3667_v36, %v2179_v30  ;;  %v2835_v49 = vpop.eup %2834 }
0x1e2d   :  { %s3060_s3 = smov [#allocation14]   ;;  %s3061_s0 = smov [#allocation15]   ;;  %v2180_v5 = vmul.f32 %v2835_v49, %v2156_v7 }
0x1e2e   :  { %s2241_s26 = sshll.u32 %s3060_s3, 4  ;;  %s2250_s5 = sshll.u32 %s3061_s0, 4  ;;  %v2201_v29 = vadd.f32 %v2199_v42, %v2190_v26  ;;  %s2242_s26 = int_to_ptr.vmem [resolvable:$true] %s2241_s26  ;;  %s3682_s5 = int_to_ptr.vmem [resolvable:$true] %s2250_s5 }
0x1e2f   :  { %s2968_s27 = scalar_lea.vmem %s2242_s26, 32  ;;  %p2973_p7 = scmp.lt.s32.totalorder %s2242_s26, %s2242_s26 }
0x1e30   :  { %p2969_p6 = scmp.ne.s32.totalorder %s2242_s26, %s2968_s27  ;;  %p2974_p8 = scmp.lt.s32.totalorder %s2968_s27, %s2968_s27 }
0x1e32   :  { %p2975_p9 = por %p2974_p8, %p2973_p7 }
0x1e34   :  { %p2976_p10 = pnand %p2975_p9, %p2969_p6 }
0x1e36   :  { %2979 = shalt.err (!%p2976_p10)
}
0x1e37   :  { %s2980_s7 = scalar_lea.hbm %s3750_s14, 32 }
0x1e38   :  { %p2981_p11 = scmp.ne.s32.totalorder %s3750_s14, %s2980_s7  ;;  %p2984_p12 = scmp.lt.u32.totalorder %s2980_s7, %s3750_s14 }
0x1e3a   :  { %p2986_p13 = pnand %p2984_p12, %p2981_p11 }
0x1e3c   :  { %2989 = shalt.err (!%p2986_p13)
}
0x1e3d   :  { %2244 = dma.vmem_to_hbm [thread:$0]  %s2242_s26, 32, %s3750_s14, [#allocation13]  }
0x1e3e   :  { %s2990_s11 = scalar_lea.vmem %s3682_s5, 256  ;;  %p2995_p1 = scmp.lt.s32.totalorder %s3682_s5, %s3682_s5 }
0x1e3f   :  { %p2991_p0 = scmp.ne.s32.totalorder %s3682_s5, %s2990_s11  ;;  %p2996_p2 = scmp.lt.s32.totalorder %s2990_s11, %s2990_s11 }
0x1e41   :  { %p2997_p3 = por %p2996_p2, %p2995_p1 }
0x1e43   :  { %p2998_p4 = pnand %p2997_p3, %p2991_p0 }
0x1e45   :  { %3001 = shalt.err (!%p2998_p4)
}
0x1e46   :  { %s3002_s22 = scalar_lea.hbm %s3751_s15, 256 }
0x1e47   :  { %p3003_p5 = scmp.ne.s32.totalorder %s3751_s15, %s3002_s22  ;;  %p3006_p6 = scmp.lt.u32.totalorder %s3002_s22, %s3751_s15 }
0x1e49   :  { %p3008_p7 = pnand %p3006_p6, %p3003_p5 }
0x1e4b   :  { %3011 = shalt.err (!%p3008_p7)
}
0x1e4c   :  { %2256 = dma.vmem_to_hbm [thread:$0]  %s3682_s5, 256, %s3751_s15, [#allocation16], %s3048_s30, %s3048_s30, %s3049_s16   ;;  %v2191_v47 = vmul.f32 %v3667_v36, %v2180_v5  ;;  %vm3777_vm9 = vmmov %vm3770_vm0 }
0x1e4d   :  { %2205 = vrot.lane.b32.xlu0 %v2201_v29, %s3057_s17  ;;  %s3062_s4 = smov [#allocation11]   ;;  %vm3778_vm10 = vmmov %vm3770_vm0 }
0x1e4e   :  { %v2202_v38 = vadd.f32 %v2199_v42, %v2191_v47  ;;  %s2218_s25 = sshll.u32 %s3062_s4, 4  ;;  %s2219_s25 = int_to_ptr.vmem [resolvable:$true] %s2218_s25 }
0x1e4f   :  { %s3012_s3 = scalar_lea.vmem %s2219_s25, 256  ;;  %p3017_p9 = scmp.lt.s32.totalorder %s2219_s25, %s2219_s25 }
0x1e50   :  { %2207 = vrot.lane.b32.xlu1 %v2202_v38, %s3057_s17  ;;  %p3013_p8 = scmp.ne.s32.totalorder %s2219_s25, %s3012_s3  ;;  %p3018_p10 = scmp.lt.s32.totalorder %s3012_s3, %s3012_s3 }
0x1e52   :  { %p3019_p11 = por %p3018_p10, %p3017_p9 }
0x1e54   :  { %p3020_p12 = pnand %p3019_p11, %p3013_p8 }
0x1ebf   :  { %v2206_v60 = vpop.permute.xlu0 %2205 }
0x1ec0   :  { %2211 = vst.msk [vmem:[#allocation11] sm:$0xff] %vm3777_vm9, %v2206_v60 }
0x1ec2   :  { %v2208_v11 = vpop.permute.xlu1 %2207 }
0x1ec3   :  { %2212 = vst.msk [vmem:[#allocation11 + $0x8] sm:$0xff] %vm3778_vm10, %v2208_v11 }
0x1ec4   :  { %3023 = shalt.err (!%p3020_p12)
}
0x1ec5   :  { %s3024_s17 = scalar_lea.hbm %s3748_s12, 256 }
0x1ec6   :  { %p3025_p13 = scmp.ne.s32.totalorder %s3748_s12, %s3024_s17  ;;  %p3028_p0 = scmp.lt.u32.totalorder %s3024_s17, %s3748_s12 }
0x1ec8   :  { %p3030_p1 = pnand %p3028_p0, %p3025_p13 }
0x1eca   :  { %3033 = shalt.err (!%p3030_p1)
}
0x1ecb   :  { %2224 = dma.vmem_to_hbm [thread:$0]  %s2219_s25, 256, %s3748_s12, [#allocation4], %s3048_s30, %s3048_s30, %s3049_s16  }
0x1ecc   :  { %3040 = dma.done.wait [#allocation4], 256  }
0x1ecd   :  { %3041 = vsyncadd [#allocation4], 4294967040 }
0x1ece   :  { %3042 = dma.done.wait [#allocation13], 64  }
0x1ecf   :  { %3043 = vsyncadd [#allocation13], 4294967232 }
0x1ed0   :  { %3044 = dma.done.wait [#allocation16], 256  }
0x1ed1   :  { %3045 = vsyncadd [#allocation16], 4294967040 }
0x1ed2   :  { %2269 = vsyncpa [#allocation3], 1 }
0x1ed3   :  { %2270 = vsyncpa [#allocation6], 1 }
0x1ed4   :  { %2271 = vsyncpa [#allocation9], 1 }
0x1ed5   :  { %2272 = vsyncpa [#allocation4], 1 }
0x1ed6   :  { %2273 = vsyncpa [#allocation13], 1 }
0x1ed7   :  { %2274 = vsyncpa [#allocation16], 1 }

</bundles_post_ra>
